<compile_context>
chip_gen: v6e
topology: v6e:2x2x1
jax: 0.10.0
libtpu: 0.0.40
codegen_flags: <defaults>
</compile_context>

<pallas_src>
import jax
import jax.numpy as jnp
from jax.experimental import pallas as pl
from jax.experimental.pallas import tpu as pltpu

LANE = 128      # vreg lane width; output last dim padded to a multiple of this
SUBLANE = 8


def _round_up(n, m):
    return ((n + m - 1) // m) * m


def _cdiv(a, b):
    return (a + b - 1) // b


def _mlp_kernel(x_ref, w1_ref, b1_ref, w2_ref, b2_ref, o_ref):
    # x_ref : (tb, 512)  f32/bf16   w1_ref: (512, 512)  bf16   b1_ref: (1, 512) f32
    # w2_ref: (512, 128) bf16       b2_ref: (1, 128)    f32    o_ref : (tb, 128) f32
    x = x_ref[...].astype(w1_ref.dtype)                                 # bf16 MXU operands
    h = jnp.dot(x, w1_ref[...], preferred_element_type=jnp.float32)     # f32 accumulate
    h = jnp.maximum(h + b1_ref[...], 0.0)                               # bias + ReLU in f32 (VPU)
    out = jnp.dot(h.astype(w2_ref.dtype), w2_ref[...],
                  preferred_element_type=jnp.float32)
    o_ref[...] = (out + b2_ref[...]).astype(o_ref.dtype)                # lane-dense (128) store


def _default_batch_tile():
    kind = jax.devices()[0].device_kind.lower()
    # v5e: ~MXU-bound at this arithmetic intensity; 1024 is plenty and fits
    # comfortably. v6e/v7x: HBM-bound; bigger tiles get closer to roofline.
    if "v5 lite" in kind or "v5e" in kind or "v5litepod" in kind:
        return 1024
    return 2048


def _vmem_limit_bytes(tb, d_in, d_hid, d_out_pad, x_itemsize, w_itemsize):
    x_buf = 2 * tb * d_in * x_itemsize                 # double-buffered x tiles
    out_buf = 2 * tb * d_out_pad * 4                   # double-buffered f32 output tiles
    weights = (d_in * d_hid + d_hid * d_out_pad) * w_itemsize \
        + (d_hid + d_out_pad) * 4                      # single-buffered weights + f32 biases
    temps = tb * d_hid * (4 + 2) + tb * d_in * 2       # h f32, h bf16, x bf16 temporaries
    need = x_buf + out_buf + weights + temps + (4 << 20)   # + headroom
    # Never below the smallest default scoped VMEM; stay well under v7x's 64 MiB.
    return int(min(max(need, 16 << 20), 48 << 20))


def _build_call(B, tb, d_in, d_hid, d_out_pad, out_dtype, vmem_limit,
                *, single_buffer_weights):
    # Weights / biases have a constant index_map -> resident in VMEM.  A single
    # pipeline buffer avoids allocating a useless second copy.
    wkw = dict(pipeline_mode=pl.Buffered(1)) if single_buffer_weights else {}

    return pl.pallas_call(
        _mlp_kernel,
        out_shape=jax.ShapeDtypeStruct((B, d_out_pad), out_dtype),
        grid_spec=pltpu.PrefetchScalarGridSpec(
            num_scalar_prefetch=0,
            grid=(pl.cdiv(B, tb),),                                       # partial last block OK
            in_specs=[
                pl.BlockSpec((tb, d_in), lambda i: (i, 0)),               # x tile
                pl.BlockSpec((d_in, d_hid), lambda i: (0, 0), **wkw),     # W1 (resident)
                pl.BlockSpec((1, d_hid), lambda i: (0, 0), **wkw),        # b1
                pl.BlockSpec((d_hid, d_out_pad), lambda i: (0, 0), **wkw),# W2 (padded N=128)
                pl.BlockSpec((1, d_out_pad), lambda i: (0, 0), **wkw),    # b2 (padded N=128)
            ],
            out_specs=pl.BlockSpec((tb, d_out_pad), lambda i: (i, 0)),
        ),
        compiler_params=pltpu.CompilerParams(
            dimension_semantics=("parallel",),
            vmem_limit_bytes=vmem_limit,
        ),
    )


def neural_network_part2(x, w1, b1, w2, b2, *, tb=None, weights_dtype=jnp.bfloat16):
    """Forward of NeuralNetworkPart2: relu(x @ w1 + b1) @ w2 + b2.

    x: [B, 512] (f32 or bf16; pass bf16 on v6e/v7x if the producer allows it);
    w1: [512, 512]; b1: [512] or [1, 512]; w2: [512, 10]; b2: [10] or [1, 10].
    Returns [B, 10] float32.  Set weights_dtype=jnp.float32 for strict f32
    parity with the PyTorch reference (slower weight DMA, same kernel).
    """
    B, d_in = x.shape
    d_hid = w1.shape[1]
    d_out = w2.shape[1]
    assert w1.shape[0] == d_in and w2.shape[0] == d_hid

    b1 = jnp.asarray(b1).reshape(1, d_hid).astype(jnp.float32)
    b2 = jnp.asarray(b2).reshape(1, d_out).astype(jnp.float32)

    # Batch tile: lane-multiple rows; keep >= 2 grid steps for large B so the
    # single "parallel" axis can split across both v7x TensorCores; never tile
    # wider than one partial block over a tiny batch.
    tb = int(tb) if tb is not None else _default_batch_tile()
    tb = _round_up(max(tb, LANE), LANE)
    if B >= 2 * LANE:
        tb = min(tb, _round_up(_cdiv(B, 2), LANE))
    tb = min(tb, _round_up(B, LANE))

    # Lane-dense output: pad N from 10 -> 128 so stores are unmasked (no more:
    # 256 would just double padded FLOPs and output traffic).
    d_out_pad = _round_up(max(d_out, LANE), LANE)

    w2_p = w2 if d_out_pad == d_out else jnp.pad(w2, ((0, 0), (0, d_out_pad - d_out)))
    b2_p = b2 if d_out_pad == d_out else jnp.pad(b2, ((0, 0), (0, d_out_pad - d_out)))

    w1_c = w1.astype(weights_dtype)
    w2_c = w2_p.astype(weights_dtype)

    vmem_limit = _vmem_limit_bytes(tb, d_in, d_hid, d_out_pad,
                                   jnp.dtype(x.dtype).itemsize,
                                   jnp.dtype(weights_dtype).itemsize)

    call = _build_call(B, tb, d_in, d_hid, d_out_pad, jnp.float32, vmem_limit,
                       single_buffer_weights=hasattr(pl, "Buffered"))
    out_p = call(x, w1_c, b1, w2_c, b2_p)

    return out_p[:, :d_out]


def _init_linear(key, fan_in, fan_out, dtype=jnp.float32):
    # Deterministic init mimicking torch.nn.Linear default (uniform +-1/sqrt(fan_in)).
    kw, kb = jax.random.split(key)
    bound = 1.0 / jnp.sqrt(jnp.asarray(fan_in, dtype))
    w = jax.random.uniform(kw, (fan_in, fan_out), dtype, -bound, bound)
    b = jax.random.uniform(kb, (1, fan_out), dtype, -bound, bound)
    return w, b


if __name__ == "__main__":
    key = jax.random.PRNGKey(0)
    kx, k1, k2 = jax.random.split(key, 3)

    B = 8                                   # small test batch (one partial 128-row block)
    x = jax.random.normal(kx, (B, 512), jnp.float32)
    w1, b1 = _init_linear(k1, 512, 512)
    w2, b2 = _init_linear(k2, 512, 10)

    out = neural_network_part2(x, w1, b1, w2, b2)
    out = jax.block_until_ready(out)
    assert out.shape == (B, 10)

    # Reference with the same bf16-operand / f32-accumulate numerics.
    w1b = w1.astype(jnp.bfloat16)
    w2b = w2.astype(jnp.bfloat16)
    h_ref = jnp.maximum(
        jnp.dot(x.astype(jnp.bfloat16), w1b, preferred_element_type=jnp.float32) + b1,
        0.0)
    ref = jnp.dot(h_ref.astype(jnp.bfloat16), w2b,
                  preferred_element_type=jnp.float32) + b2
    assert jnp.allclose(out, ref, atol=2e-3, rtol=2e-3), float(jnp.max(jnp.abs(out - ref)))

    # Sanity vs. full-f32 math (loose tolerance for the bf16 matmul operands).
    ref_f32 = jnp.maximum(x @ w1 + b1, 0.0) @ w2 + b2
    assert jnp.allclose(out, ref_f32, atol=6e-2, rtol=2e-2)

    print("KERNEL_OK")
</pallas_src>

<mosaic_0001>
module attributes {stable_mosaic.version = 11 : i64} {
  func.func @_mlp_kernel(%arg0: i32, %arg1: memref<128x512xf32, #tpu.memory_space<vmem>>, %arg2: memref<512x512xbf16, #tpu.memory_space<vmem>>, %arg3: memref<1x512xf32, #tpu.memory_space<vmem>>, %arg4: memref<512x128xbf16, #tpu.memory_space<vmem>>, %arg5: memref<1x128xf32, #tpu.memory_space<vmem>>, %arg6: memref<128x128xf32, #tpu.memory_space<vmem>>) attributes {dimension_semantics = [#tpu.dimension_semantics<parallel>], iteration_bounds = array<i64: 1>, scalar_prefetch = 0 : i64, scratch_operands = 0 : i64, tpu.core_type = #tpu.core_type<tc>, window_params = [{transform_indices = @transform_0, window_bounds = array<i64: 128, 512>}, {pipeline_mode = #tpu.pipeline_mode<synchronous>, transform_indices = @transform_1, window_bounds = array<i64: 512, 512>}, {pipeline_mode = #tpu.pipeline_mode<synchronous>, transform_indices = @transform_2, window_bounds = array<i64: 1, 512>}, {pipeline_mode = #tpu.pipeline_mode<synchronous>, transform_indices = @transform_3, window_bounds = array<i64: 512, 128>}, {pipeline_mode = #tpu.pipeline_mode<synchronous>, transform_indices = @transform_4, window_bounds = array<i64: 1, 128>}, {transform_indices = @transform_5, window_bounds = array<i64: 128, 128>}]} {
    %c0 = arith.constant 0 : index
    %c0_0 = arith.constant 0 : index
    %0 = vector.load %arg1[%c0, %c0_0] : memref<128x512xf32, #tpu.memory_space<vmem>>, vector<128x512xf32>
    %1 = arith.truncf %0 : vector<128x512xf32> to vector<128x512xbf16>
    %c0_1 = arith.constant 0 : index
    %c0_2 = arith.constant 0 : index
    %2 = vector.load %arg2[%c0_1, %c0_2] : memref<512x512xbf16, #tpu.memory_space<vmem>>, vector<512x512xbf16>
    %cst = arith.constant dense<0.000000e+00> : vector<128x512xf32>
    %3 = tpu.matmul %1, %2, %cst {dimension_numbers = #tpu.dot_dimension_numbers<[1], [0], [0], [1], [0, 0, 1, 1], [], []>} : vector<128x512xbf16>, vector<512x512xbf16>, vector<128x512xf32> -> vector<128x512xf32>
    %c0_3 = arith.constant 0 : index
    %c0_4 = arith.constant 0 : index
    %4 = vector.load %arg3[%c0_3, %c0_4] : memref<1x512xf32, #tpu.memory_space<vmem>>, vector<1x512xf32>
    %5 = vector.broadcast %4 : vector<1x512xf32> to vector<128x512xf32>
    %6 = arith.addf %3, %5 : vector<128x512xf32>
    %cst_5 = arith.constant 0.000000e+00 : f32
    %7 = vector.broadcast %cst_5 : f32 to vector<128x512xf32>
    %8 = arith.maximumf %6, %7 : vector<128x512xf32>
    %9 = arith.truncf %8 : vector<128x512xf32> to vector<128x512xbf16>
    %c0_6 = arith.constant 0 : index
    %c0_7 = arith.constant 0 : index
    %10 = vector.load %arg4[%c0_6, %c0_7] : memref<512x128xbf16, #tpu.memory_space<vmem>>, vector<512x128xbf16>
    %cst_8 = arith.constant dense<0.000000e+00> : vector<128x128xf32>
    %11 = tpu.matmul %9, %10, %cst_8 {dimension_numbers = #tpu.dot_dimension_numbers<[1], [0], [0], [1], [0, 0, 1, 1], [], []>} : vector<128x512xbf16>, vector<512x128xbf16>, vector<128x128xf32> -> vector<128x128xf32>
    %c0_9 = arith.constant 0 : index
    %c0_10 = arith.constant 0 : index
    %12 = vector.load %arg5[%c0_9, %c0_10] : memref<1x128xf32, #tpu.memory_space<vmem>>, vector<1x128xf32>
    %13 = vector.broadcast %12 : vector<1x128xf32> to vector<128x128xf32>
    %14 = arith.addf %11, %13 : vector<128x128xf32>
    %c0_11 = arith.constant 0 : index
    %c0_12 = arith.constant 0 : index
    %15 = vector.load %arg6[%c0_11, %c0_12] : memref<128x128xf32, #tpu.memory_space<vmem>>, vector<128x128xf32>
    tpu.vector_store %arg6[%c0_11, %c0_12], %14 {strides = array<i32>} : memref<128x128xf32, #tpu.memory_space<vmem>>, vector<128x128xf32>,
    return
  }
  func.func @transform_0(%arg0: i32) -> (i32, i32) {
    %c0_i32 = arith.constant 0 : i32
    %c0_i32_0 = arith.constant 0 : i32
    return %arg0, %c0_i32 : i32, i32
  }
  func.func @transform_1(%arg0: i32) -> (i32, i32) {
    %c0_i32 = arith.constant 0 : i32
    %c0_i32_0 = arith.constant 0 : i32
    %c0_i32_1 = arith.constant 0 : i32
    return %c0_i32, %c0_i32_0 : i32, i32
  }
  func.func @transform_2(%arg0: i32) -> (i32, i32) {
    %c0_i32 = arith.constant 0 : i32
    %c0_i32_0 = arith.constant 0 : i32
    %c0_i32_1 = arith.constant 0 : i32
    return %c0_i32, %c0_i32_0 : i32, i32
  }
  func.func @transform_3(%arg0: i32) -> (i32, i32) {
    %c0_i32 = arith.constant 0 : i32
    %c0_i32_0 = arith.constant 0 : i32
    %c0_i32_1 = arith.constant 0 : i32
    return %c0_i32, %c0_i32_0 : i32, i32
  }
  func.func @transform_4(%arg0: i32) -> (i32, i32) {
    %c0_i32 = arith.constant 0 : i32
    %c0_i32_0 = arith.constant 0 : i32
    %c0_i32_1 = arith.constant 0 : i32
    return %c0_i32, %c0_i32_0 : i32, i32
  }
  func.func @transform_5(%arg0: i32) -> (i32, i32) {
    %c0_i32 = arith.constant 0 : i32
    %c0_i32_0 = arith.constant 0 : i32
    return %arg0, %c0_i32 : i32, i32
  }
}

</mosaic_0001>

<bundles_post_ra>
// kernel: tpu_custom_call.1
= control target key start
LH: loop header
LB: loop body
LE: loop exit
PB: predicated region body
PF: predicated region fallthrough
CT: control target
= control target key end

     0   :  { %10 = vsyncpa [#allocation3], 0  ;;  %s2926_s0 = inlined_call_operand.hbm [shape: f32[8,512], index: 0, kind: input, shape index: {}]   ;;  %s2927_s1 = inlined_call_operand.hbm [shape: bf16[512,512], index: 1, kind: input, shape index: {}]   ;;  %s2928_s2 = inlined_call_operand.hbm [shape: f32[1,512], index: 2, kind: input, shape index: {}]   ;;  %s2929_s3 = inlined_call_operand.hbm [shape: bf16[512,128], index: 3, kind: input, shape index: {}]   ;;  %s2930_s4 = inlined_call_operand.vmem [shape: f32[1,128], index: 4, kind: input, shape index: {}]   ;;  %s2931_s5 = inlined_call_operand.hbm [shape: f32[8,128], index: 5, kind: output, shape index: {}]  }
   0x1   :  { %11 = vsyncpa [#allocation6], 0 }
   0x2   :  { %12 = vsyncpa [#allocation9], 0 }
   0x3   :  { %13 = vsyncpa [#allocation4], 0 }
   0x4   :  { %18 = vsyncadd [#allocation3], 7680  ;;  %s2635_s18 = smov [#allocation5]  }
   0x5   :  { %s31_s19 = sshll.u32 %s2635_s18, 4  ;;  %s32_s19 = int_to_ptr.vmem [resolvable:$true] %s31_s19 }
   0x6   :  { %s2535_s20 = scalar_lea.vmem %s32_s19, 16384  ;;  %p2540_p1 = scmp.lt.s32.totalorder %s32_s19, %s32_s19 }
   0x7   :  { %p2536_p0 = scmp.ne.s32.totalorder %s32_s19, %s2535_s20  ;;  %p2541_p2 = scmp.lt.s32.totalorder %s2535_s20, %s2535_s20 }
   0x9   :  { %p2542_p3 = por %p2541_p2, %p2540_p1 }
   0xb   :  { %p2543_p4 = pnand %p2542_p3, %p2536_p0 }
   0xd   :  { %2546 = shalt.err (!%p2543_p4)
}
   0xe   :  { %s2636_s21 = smov 256   ;;  %s2637_s22 = smov 16  }
   0xf   :  { %37 = dma.hbm_to_vmem [thread:$0]  %s2927_s1, 16384, %s32_s19, [#allocation6], %s2636_s21, %s2636_s21, %s2637_s22  }
  0x10   :  { %s2638_s25 = smov [#allocation2]  }
  0x11   :  { %s19_s26 = sshll.u32 %s2638_s25, 4  ;;  %s20_s26 = int_to_ptr.vmem [resolvable:$true] %s19_s26 }
  0x12   :  { %s2555_s27 = scalar_lea.vmem %s20_s26, 512  ;;  %s2559_s28 = scalar_lea.vmem %s20_s26, 8192 }
  0x13   :  { %p2556_p5 = scmp.ne.s32.totalorder %s20_s26, %s2555_s27  ;;  %p2560_p6 = scmp.lt.s32.totalorder %s20_s26, %s20_s26 }
  0x14   :  { %p2561_p7 = scmp.lt.s32.totalorder %s2559_s28, %s2555_s27 }
  0x16   :  { %p2562_p8 = por %p2561_p7, %p2560_p6 }
  0x18   :  { %p2563_p9 = pnand %p2562_p8, %p2556_p5 }
  0x1a   :  { %2566 = shalt.err (!%p2563_p9)
}
  0x1b   :  { %s2639_s29 = smov 512   ;;  %s2640_s30 = smov 32  }
  0x1c   :  { %25 = dma.hbm_to_vmem [thread:$0]  %s2926_s0, 512, %s20_s26, [#allocation3], %s2639_s29, %s2639_s29, %s2640_s30  }
  0x1d   :  { %s2641_s8 = smov [#allocation7]   ;;  %s2642_s1 = smov [#allocation8]  }
  0x1e   :  { %s44_s9 = sshll.u32 %s2641_s8, 4  ;;  %s53_s10 = sshll.u32 %s2642_s1, 4  ;;  %s45_s9 = int_to_ptr.vmem [resolvable:$true] %s44_s9  ;;  %s54_s10 = int_to_ptr.vmem [resolvable:$true] %s53_s10 }
  0x1f   :  { %s2575_s11 = scalar_lea.vmem %s45_s9, 64  ;;  %p2580_p11 = scmp.lt.s32.totalorder %s45_s9, %s45_s9 }
  0x20   :  { %p2576_p10 = scmp.ne.s32.totalorder %s45_s9, %s2575_s11  ;;  %p2581_p12 = scmp.lt.s32.totalorder %s2575_s11, %s2575_s11 }
  0x22   :  { %p2582_p13 = por %p2581_p12, %p2580_p11 }
  0x24   :  { %p2583_p0 = pnand %p2582_p13, %p2576_p10 }
  0x26   :  { %2586 = shalt.err (!%p2583_p0)
}
  0x27   :  { %47 = dma.hbm_to_vmem [thread:$0]  %s2928_s2, 64, %s45_s9, [#allocation6]  }
  0x28   :  { %s2595_s14 = scalar_lea.vmem %s54_s10, 4096  ;;  %p2600_p2 = scmp.lt.s32.totalorder %s54_s10, %s54_s10 }
  0x29   :  { %p2596_p1 = scmp.ne.s32.totalorder %s54_s10, %s2595_s14  ;;  %p2601_p3 = scmp.lt.s32.totalorder %s2595_s14, %s2595_s14 }
  0x2b   :  { %p2602_p4 = por %p2601_p3, %p2600_p2 }
  0x2d   :  { %p2603_p5 = pnand %p2602_p4, %p2596_p1 }
  0x2f   :  { %2606 = shalt.err (!%p2603_p5)
}
  0x30   :  { %s2643_s0 = smov 64   ;;  %s2644_s15 = smov 4  }
  0x31   :  { %59 = dma.hbm_to_vmem [thread:$0]  %s2929_s3, 4096, %s54_s10, [#allocation9], %s2643_s0, %s2643_s0, %s2644_s15  }
  0x32   :  { %2627 = dma.done.wait [#allocation3], 8192  }
  0x33   :  { %2628 = vsyncadd [#allocation3], 4294959104 }
  0x34   :  { %2629 = dma.done.wait [#allocation6], 16448  }
  0x35   :  { %2630 = vsyncadd [#allocation6], 4294950848 }
  0x36   :  { %2631 = dma.done.wait [#allocation9], 4096  }
  0x37   :  { %2632 = vsyncadd [#allocation9], 4294963200  ;;  %v2303_v0 = vld [vmem:[#allocation5 + $0xe4] ss:$16 sps:$4 sm:$0xff]   ;;  %v2307_v2 = vld [vmem:[#allocation5 + $0xe0] ss:$16 sps:$4 sm:$0xff]  }
  0x38   :  { %v2305_v1 = vld [vmem:[#allocation5 + $0x2e4] ss:$16 sps:$4 sm:$0xff]   ;;  %961 = vmatprep.subr.bf16.mxu0 %v2303_v0  ;;  %v2308_v3 = vld [vmem:[#allocation5 + $0x2e0] ss:$16 sps:$4 sm:$0xff]   ;;  %v76_v46 = vld [vmem:[#allocation2 + $0x8] sm:$0xff] }
  0x39   :  { %1074 = vmatprep.subr.bf16.mxu1 %v2305_v1  ;;  %v2309_v4 = vld [vmem:[#allocation5 + $0xc4] ss:$16 sps:$4 sm:$0xff]   ;;  %962 = vmatpush1.bf16.msra.mxu0 %v2307_v2  ;;  %v2313_v6 = vld [vmem:[#allocation5 + $0xc0] ss:$16 sps:$4 sm:$0xff]   ;;  %v80_v47 = vld [vmem:[#allocation2 + $0x28] sm:$0xff] }
  0x3a   :  { %1075 = vmatpush1.bf16.msra.mxu1 %v2308_v3  ;;  %v2311_v5 = vld [vmem:[#allocation5 + $0x2c4] ss:$16 sps:$4 sm:$0xff]   ;;  %963 = vmatprep.subr.bf16.mxu0 %v2309_v4  ;;  %v2314_v7 = vld [vmem:[#allocation5 + $0x2c0] ss:$16 sps:$4 sm:$0xff]   ;;  %v78_v48 = vld [vmem:[#allocation2 + $0x18] sm:$0xff]  ;;  %v2690_v53 = vpack.c.bf16 %v80_v47, %v76_v46 }
  0x3b   :  { %1076 = vmatprep.subr.bf16.mxu1 %v2311_v5  ;;  %v2315_v8 = vld [vmem:[#allocation5 + $0xa4] ss:$16 sps:$4 sm:$0xff]   ;;  %v2319_v10 = vld [vmem:[#allocation5 + $0xa0] ss:$16 sps:$4 sm:$0xff]   ;;  %v82_v49 = vld [vmem:[#allocation2 + $0x38] sm:$0xff] }
  0x3c   :  { %v2317_v9 = vld [vmem:[#allocation5 + $0x2a4] ss:$16 sps:$4 sm:$0xff]   ;;  %v2320_v11 = vld [vmem:[#allocation5 + $0x2a0] ss:$16 sps:$4 sm:$0xff]   ;;  %v2692_v54 = vpack.c.bf16 %v82_v49, %v78_v48  ;;  %993 = vmatprep.mubr.bf16.mxu0 %v2690_v53 }
  0x3d   :  { %964 = vmatpush1.bf16.msra.mxu0 %v2313_v6  ;;  %v2321_v12 = vld [vmem:[#allocation5 + $0x84] ss:$16 sps:$4 sm:$0xff]   ;;  %v2325_v14 = vld [vmem:[#allocation5 + $0x80] ss:$16 sps:$4 sm:$0xff]  }
  0x3e   :  { %1077 = vmatpush1.bf16.msra.mxu1 %v2314_v7  ;;  %965 = vmatprep.subr.bf16.mxu0 %v2315_v8  ;;  %v2323_v13 = vld [vmem:[#allocation5 + $0x284] ss:$16 sps:$4 sm:$0xff]   ;;  %v2326_v15 = vld [vmem:[#allocation5 + $0x280] ss:$16 sps:$4 sm:$0xff]  }
  0x3f   :  { %1078 = vmatprep.subr.bf16.mxu1 %v2317_v9  ;;  %v2327_v16 = vld [vmem:[#allocation5 + $0x64] ss:$16 sps:$4 sm:$0xff]   ;;  %v2331_v18 = vld [vmem:[#allocation5 + $0x60] ss:$16 sps:$4 sm:$0xff]   ;;  %1106 = vmatprep.mubr.bf16.mxu1 %v2692_v54 }
  0x40   :  { %v2329_v17 = vld [vmem:[#allocation5 + $0x264] ss:$16 sps:$4 sm:$0xff]   ;;  %v2332_v19 = vld [vmem:[#allocation5 + $0x260] ss:$16 sps:$4 sm:$0xff]  }
  0x41   :  { %966 = vmatpush1.bf16.msra.mxu0 %v2319_v10  ;;  %v2333_v20 = vld [vmem:[#allocation5 + $0x44] ss:$16 sps:$4 sm:$0xff]   ;;  %v2337_v22 = vld [vmem:[#allocation5 + $0x40] ss:$16 sps:$4 sm:$0xff]   ;;  %v2401_v10 = vld [vmem:[#allocation5 + $0xec] ss:$16 sps:$4 sm:$0xff]  }
  0x42   :  { %1079 = vmatpush1.bf16.msra.mxu1 %v2320_v11  ;;  %967 = vmatprep.subr.bf16.mxu0 %v2321_v12  ;;  %v2335_v21 = vld [vmem:[#allocation5 + $0x244] ss:$16 sps:$4 sm:$0xff]   ;;  %v2338_v23 = vld [vmem:[#allocation5 + $0x240] ss:$16 sps:$4 sm:$0xff]   ;;  %v2404_v11 = vld [vmem:[#allocation5 + $0x2ec] ss:$16 sps:$4 sm:$0xff]  }
  0x43   :  { %1080 = vmatprep.subr.bf16.mxu1 %v2323_v13  ;;  %v2339_v24 = vld [vmem:[#allocation5 + $0x24] ss:$16 sps:$4 sm:$0xff]   ;;  %v2343_v26 = vld [vmem:[#allocation5 + $0x20] ss:$16 sps:$4 sm:$0xff]   ;;  %v2399_v12 = vld [vmem:[#allocation5 + $0xe8] ss:$16 sps:$4 sm:$0xff]  }
  0x44   :  { %v2341_v25 = vld [vmem:[#allocation5 + $0x224] ss:$16 sps:$4 sm:$0xff]   ;;  %v2344_v27 = vld [vmem:[#allocation5 + $0x220] ss:$16 sps:$4 sm:$0xff]   ;;  %v2402_v13 = vld [vmem:[#allocation5 + $0x2e8] ss:$16 sps:$4 sm:$0xff]  }
  0x45   :  { %968 = vmatpush1.bf16.msra.mxu0 %v2325_v14  ;;  %v2345_v28 = vld [vmem:[#allocation5 + $0x4] ss:$16 sps:$4 sm:$0xff]   ;;  %v2349_v30 = vld [vmem:[#allocation5] ss:$16 sps:$4 sm:$0xff]   ;;  %v84_v14 = vld [vmem:[#allocation2 + $0x48] sm:$0xff] }
  0x46   :  { %1081 = vmatpush1.bf16.msra.mxu1 %v2326_v15  ;;  %969 = vmatprep.subr.bf16.mxu0 %v2327_v16  ;;  %v2347_v29 = vld [vmem:[#allocation5 + $0x204] ss:$16 sps:$4 sm:$0xff]   ;;  %v2350_v31 = vld [vmem:[#allocation5 + $0x200] ss:$16 sps:$4 sm:$0xff]   ;;  %v88_v15 = vld [vmem:[#allocation2 + $0x68] sm:$0xff] }
  0x47   :  { %1082 = vmatprep.subr.bf16.mxu1 %v2329_v17  ;;  %v2351_v32 = vld [vmem:[#allocation5 + $0x1e4] ss:$16 sps:$4 sm:$0xff]   ;;  %v2355_v34 = vld [vmem:[#allocation5 + $0x1e0] ss:$16 sps:$4 sm:$0xff]  }
  0x48   :  { %v2353_v33 = vld [vmem:[#allocation5 + $0x3e4] ss:$16 sps:$4 sm:$0xff]   ;;  %v2356_v35 = vld [vmem:[#allocation5 + $0x3e0] ss:$16 sps:$4 sm:$0xff]  }
  0x49   :  { %970 = vmatpush1.bf16.msra.mxu0 %v2331_v18  ;;  %v2357_v36 = vld [vmem:[#allocation5 + $0x1c4] ss:$16 sps:$4 sm:$0xff]   ;;  %v2361_v38 = vld [vmem:[#allocation5 + $0x1c0] ss:$16 sps:$4 sm:$0xff]   ;;  %v86_v18 = vld [vmem:[#allocation2 + $0x58] sm:$0xff] }
  0x4a   :  { %1083 = vmatpush1.bf16.msra.mxu1 %v2332_v19  ;;  %971 = vmatprep.subr.bf16.mxu0 %v2333_v20  ;;  %v2359_v37 = vld [vmem:[#allocation5 + $0x3c4] ss:$16 sps:$4 sm:$0xff]   ;;  %v2362_v39 = vld [vmem:[#allocation5 + $0x3c0] ss:$16 sps:$4 sm:$0xff]   ;;  %v90_v19 = vld [vmem:[#allocation2 + $0x78] sm:$0xff] }
  0x4b   :  { %1084 = vmatprep.subr.bf16.mxu1 %v2335_v21  ;;  %v2363_v40 = vld [vmem:[#allocation5 + $0x1a4] ss:$16 sps:$4 sm:$0xff]   ;;  %v2367_v42 = vld [vmem:[#allocation5 + $0x1a0] ss:$16 sps:$4 sm:$0xff]   ;;  %v2407_v20 = vld [vmem:[#allocation5 + $0xcc] ss:$16 sps:$4 sm:$0xff]  }
  0x4c   :  { %v2365_v41 = vld [vmem:[#allocation5 + $0x3a4] ss:$16 sps:$4 sm:$0xff]   ;;  %v2368_v43 = vld [vmem:[#allocation5 + $0x3a0] ss:$16 sps:$4 sm:$0xff]   ;;  %v2410_v21 = vld [vmem:[#allocation5 + $0x2cc] ss:$16 sps:$4 sm:$0xff]  }
  0x4d   :  { %972 = vmatpush1.bf16.msra.mxu0 %v2337_v22  ;;  %v2369_v44 = vld [vmem:[#allocation5 + $0x184] ss:$16 sps:$4 sm:$0xff]   ;;  %v2373_v50 = vld [vmem:[#allocation5 + $0x180] ss:$16 sps:$4 sm:$0xff]   ;;  %v2405_v22 = vld [vmem:[#allocation5 + $0xc8] ss:$16 sps:$4 sm:$0xff]  }
  0x4e   :  { %1085 = vmatpush1.bf16.msra.mxu1 %v2338_v23  ;;  %973 = vmatprep.subr.bf16.mxu0 %v2339_v24  ;;  %v2371_v45 = vld [vmem:[#allocation5 + $0x384] ss:$16 sps:$4 sm:$0xff]   ;;  %v2374_v51 = vld [vmem:[#allocation5 + $0x380] ss:$16 sps:$4 sm:$0xff]   ;;  %v2700_v23 = vpack.c.bf16 %v88_v15, %v84_v14  ;;  %v2702_v24 = vpack.c.bf16 %v90_v19, %v86_v18  ;;  %v110_v18 = vld [vmem:[#allocation2 + $0x118] sm:$0xff] }
  0x4f   :  { %1086 = vmatprep.subr.bf16.mxu1 %v2341_v25  ;;  %v2375_v52 = vld [vmem:[#allocation5 + $0x164] ss:$16 sps:$4 sm:$0xff]   ;;  %v2379_v56 = vld [vmem:[#allocation5 + $0x160] ss:$16 sps:$4 sm:$0xff]   ;;  %v2408_v25 = vld [vmem:[#allocation5 + $0x2c8] ss:$16 sps:$4 sm:$0xff]  }
  0x50   :  { %v2377_v55 = vld [vmem:[#allocation5 + $0x364] ss:$16 sps:$4 sm:$0xff]   ;;  %v2380_v57 = vld [vmem:[#allocation5 + $0x360] ss:$16 sps:$4 sm:$0xff]   ;;  %v114_v19 = vld [vmem:[#allocation2 + $0x138] sm:$0xff] }
  0x51   :  { %974 = vmatpush1.bf16.msra.mxu0 %v2343_v26  ;;  %v2381_v58 = vld [vmem:[#allocation5 + $0x144] ss:$16 sps:$4 sm:$0xff]   ;;  %v2385_v60 = vld [vmem:[#allocation5 + $0x140] ss:$16 sps:$4 sm:$0xff]  }
  0x52   :  { %1087 = vmatpush1.bf16.msra.mxu1 %v2344_v27  ;;  %975 = vmatprep.subr.bf16.mxu0 %v2345_v28  ;;  %v2383_v59 = vld [vmem:[#allocation5 + $0x344] ss:$16 sps:$4 sm:$0xff]   ;;  %v2386_v61 = vld [vmem:[#allocation5 + $0x340] ss:$16 sps:$4 sm:$0xff]  }
  0x53   :  { %1088 = vmatprep.subr.bf16.mxu1 %v2347_v29  ;;  %v2387_v62 = vld [vmem:[#allocation5 + $0x124] ss:$16 sps:$4 sm:$0xff]   ;;  %v2391_v0 = vld [vmem:[#allocation5 + $0x120] ss:$16 sps:$4 sm:$0xff]  }
  0x54   :  { %v2389_v63 = vld [vmem:[#allocation5 + $0x324] ss:$16 sps:$4 sm:$0xff]   ;;  %v2392_v1 = vld [vmem:[#allocation5 + $0x320] ss:$16 sps:$4 sm:$0xff]  }
  0x55   :  { %976 = vmatpush1.bf16.msra.mxu0 %v2349_v30  ;;  %v2393_v2 = vld [vmem:[#allocation5 + $0x104] ss:$16 sps:$4 sm:$0xff]   ;;  %v2397_v4 = vld [vmem:[#allocation5 + $0x100] ss:$16 sps:$4 sm:$0xff]   ;;  %v2413_v30 = vld [vmem:[#allocation5 + $0xac] ss:$16 sps:$4 sm:$0xff]  }
  0x56   :  { %1089 = vmatpush1.bf16.msra.mxu1 %v2350_v31  ;;  %977 = vmatprep.subr.bf16.mxu0 %v2351_v32  ;;  %v2395_v3 = vld [vmem:[#allocation5 + $0x304] ss:$16 sps:$4 sm:$0xff]   ;;  %v2398_v5 = vld [vmem:[#allocation5 + $0x300] ss:$16 sps:$4 sm:$0xff]   ;;  %v2416_v31 = vld [vmem:[#allocation5 + $0x2ac] ss:$16 sps:$4 sm:$0xff]  }
  0x57   :  { %1090 = vmatprep.subr.bf16.mxu1 %v2353_v33  ;;  %v75_v6 = vld [vmem:[#allocation2] sm:$0xff]  ;;  %v77_v8 = vld [vmem:[#allocation2 + $0x10] sm:$0xff]  ;;  %v2411_v32 = vld [vmem:[#allocation5 + $0xa8] ss:$16 sps:$4 sm:$0xff]  }
  0x58   :  { %v79_v7 = vld [vmem:[#allocation2 + $0x20] sm:$0xff]  ;;  %v81_v9 = vld [vmem:[#allocation2 + $0x30] sm:$0xff]  ;;  %v2414_v33 = vld [vmem:[#allocation5 + $0x2a8] ss:$16 sps:$4 sm:$0xff]  }
  0x59   :  { %978 = vmatpush2.bf16.msra.mxu0 %v2355_v34  ;;  %v2696_v16 = vpack.c.bf16 %v79_v7, %v75_v6  ;;  %v2698_v17 = vpack.c.bf16 %v81_v9, %v77_v8  ;;  %v83_v26 = vld [vmem:[#allocation2 + $0x40] sm:$0xff]  ;;  %v85_v28 = vld [vmem:[#allocation2 + $0x50] sm:$0xff]  ;;  %v92_v34 = vld [vmem:[#allocation2 + $0x88] sm:$0xff] }
  0x5a   :  { %1091 = vmatpush2.bf16.msra.mxu1 %v2356_v35  ;;  %979 = vmatprep.subr.bf16.mxu0 %v2357_v36  ;;  %v87_v27 = vld [vmem:[#allocation2 + $0x60] sm:$0xff]  ;;  %v89_v29 = vld [vmem:[#allocation2 + $0x70] sm:$0xff]  ;;  %v96_v35 = vld [vmem:[#allocation2 + $0xa8] sm:$0xff] }
  0x5b   :  { %1092 = vmatprep.subr.bf16.mxu1 %v2359_v37  ;;  %v2708_v36 = vpack.c.bf16 %v87_v27, %v83_v26  ;;  %v2710_v37 = vpack.c.bf16 %v89_v29, %v85_v28  ;;  %v91_v46 = vld [vmem:[#allocation2 + $0x80] sm:$0xff]  ;;  %v93_v48 = vld [vmem:[#allocation2 + $0x90] sm:$0xff]  ;;  %v2437_v8 = vld [vmem:[#allocation5 + $0x2c] ss:$16 sps:$4 sm:$0xff]   ;;  %v2738_v26 = vpack.c.bf16 %v114_v19, %v110_v18 }
  0x5c   :  { %v95_v47 = vld [vmem:[#allocation2 + $0xa0] sm:$0xff]  ;;  %v97_v49 = vld [vmem:[#allocation2 + $0xb0] sm:$0xff]  ;;  %v2440_v9 = vld [vmem:[#allocation5 + $0x22c] ss:$16 sps:$4 sm:$0xff]  }
  0x5d   :  { %980 = vmatpush2.bf16.msra.mxu0 %v2361_v38  ;;  %v94_v38 = vld [vmem:[#allocation2 + $0x98] sm:$0xff]  ;;  %v101_v6 = vld [vmem:[#allocation2 + $0xd0] sm:$0xff]  ;;  %v107_v28 = vld [vmem:[#allocation2 + $0x100] sm:$0xff] }
  0x5e   :  { %1093 = vmatpush2.bf16.msra.mxu1 %v2362_v39  ;;  %981 = vmatprep.subr.bf16.mxu0 %v2363_v40  ;;  %v98_v39 = vld [vmem:[#allocation2 + $0xb8] sm:$0xff]  ;;  %v105_v7 = vld [vmem:[#allocation2 + $0xf0] sm:$0xff]  ;;  %v111_v29 = vld [vmem:[#allocation2 + $0x120] sm:$0xff] }
  0x5f   :  { %1094 = vmatprep.subr.bf16.mxu1 %v2365_v41  ;;  %v2419_v40 = vld [vmem:[#allocation5 + $0x8c] ss:$16 sps:$4 sm:$0xff]   ;;  %v2734_v15 = vpack.c.bf16 %v105_v7, %v101_v6  ;;  %v2444_v27 = vld [vmem:[#allocation5 + $0x208] ss:$16 sps:$4 sm:$0xff]   ;;  %v123_v18 = vld [vmem:[#allocation2 + $0x180] sm:$0xff] }
  0x60   :  { %v2422_v41 = vld [vmem:[#allocation5 + $0x28c] ss:$16 sps:$4 sm:$0xff]   ;;  %v127_v19 = vld [vmem:[#allocation2 + $0x1a0] sm:$0xff] }
  0x61   :  { %982 = vmatpush2.bf16.msra.mxu0 %v2367_v42  ;;  %v2417_v42 = vld [vmem:[#allocation5 + $0x88] ss:$16 sps:$4 sm:$0xff]  }
  0x62   :  { %1095 = vmatpush2.bf16.msra.mxu1 %v2368_v43  ;;  %983 = vmatprep.subr.bf16.mxu0 %v2369_v44  ;;  %v2712_v43 = vpack.c.bf16 %v96_v35, %v92_v34  ;;  %v2714_v44 = vpack.c.bf16 %v98_v39, %v94_v38  ;;  %v2447_v34 = vld [vmem:[#allocation5 + $0x1e8] ss:$16 sps:$4 sm:$0xff]  }
  0x63   :  { %1096 = vmatprep.subr.bf16.mxu1 %v2371_v45  ;;  %v2420_v45 = vld [vmem:[#allocation5 + $0x288] ss:$16 sps:$4 sm:$0xff]  }
  0x64   :  { %v2450_v35 = vld [vmem:[#allocation5 + $0x3e8] ss:$16 sps:$4 sm:$0xff]  }
  0x65   :  { %984 = vmatpush2.bf16.msra.mxu0 %v2373_v50  ;;  %v2425_v50 = vld [vmem:[#allocation5 + $0x6c] ss:$16 sps:$4 sm:$0xff]  }
  0x66   :  { %1097 = vmatpush2.bf16.msra.mxu1 %v2374_v51  ;;  %985 = vmatprep.subr.bf16.mxu0 %v2375_v52  ;;  %v2428_v51 = vld [vmem:[#allocation5 + $0x26c] ss:$16 sps:$4 sm:$0xff]   ;;  %v2423_v52 = vld [vmem:[#allocation5 + $0x68] ss:$16 sps:$4 sm:$0xff]  }
  0x67   :  { %1098 = vmatprep.subr.bf16.mxu1 %v2377_v55  ;;  %v2426_v55 = vld [vmem:[#allocation5 + $0x268] ss:$16 sps:$4 sm:$0xff]  }
  0x68   :  { %v116_v38 = vld [vmem:[#allocation2 + $0x148] sm:$0xff]  ;;  %v126_v6 = vld [vmem:[#allocation2 + $0x198] sm:$0xff] }
  0x69   :  { %986 = vmatpush2.bf16.msra.mxu0 %v2379_v56  ;;  %v100_v56 = vld [vmem:[#allocation2 + $0xc8] sm:$0xff]  ;;  %v130_v7 = vld [vmem:[#allocation2 + $0x1b8] sm:$0xff] }
  0x6a   :  { %1099 = vmatpush2.bf16.msra.mxu1 %v2380_v57  ;;  %987 = vmatprep.subr.bf16.mxu0 %v2381_v58  ;;  %v104_v57 = vld [vmem:[#allocation2 + $0xe8] sm:$0xff]  ;;  %v2720_v58 = vpack.c.bf16 %v95_v47, %v91_v46 }
  0x6b   :  { %1100 = vmatprep.subr.bf16.mxu1 %v2383_v59  ;;  %v2722_v59 = vpack.c.bf16 %v97_v49, %v93_v48  ;;  %v120_v39 = vld [vmem:[#allocation2 + $0x168] sm:$0xff] }
  0x6c   :  { %v2455_v46 = vld [vmem:[#allocation5 + $0x1cc] ss:$16 sps:$4 sm:$0xff]   ;;  %v2453_v48 = vld [vmem:[#allocation5 + $0x1c8] ss:$16 sps:$4 sm:$0xff]   ;;  %v2748_v49 = vpack.c.bf16 %v120_v39, %v116_v38 }
  0x6d   :  { %988 = vmatpush2.bf16.msra.mxu0 %v2385_v60  ;;  %v102_v60 = vld [vmem:[#allocation2 + $0xd8] sm:$0xff] }
  0x6e   :  { %1101 = vmatpush2.bf16.msra.mxu1 %v2386_v61  ;;  %989 = vmatprep.subr.bf16.mxu0 %v2387_v62  ;;  %v106_v61 = vld [vmem:[#allocation2 + $0xf8] sm:$0xff] }
  0x6f   :  { %1102 = vmatprep.subr.bf16.mxu1 %v2389_v63  ;;  %v2431_v62 = vld [vmem:[#allocation5 + $0x4c] ss:$16 sps:$4 sm:$0xff]  }
  0x70   :  { %v2434_v63 = vld [vmem:[#allocation5 + $0x24c] ss:$16 sps:$4 sm:$0xff]  }
  0x71   :  { %990 = vmatpush2.bf16.msra.mxu0 %v2391_v0  ;;  %v2429_v0 = vld [vmem:[#allocation5 + $0x48] ss:$16 sps:$4 sm:$0xff]   ;;  %v2458_v47 = vld [vmem:[#allocation5 + $0x3cc] ss:$16 sps:$4 sm:$0xff]  }
  0x72   :  { %1103 = vmatpush2.bf16.msra.mxu1 %v2392_v1  ;;  %991 = vmatprep.subr.bf16.mxu0 %v2393_v2  ;;  %v2724_v1 = vpack.c.bf16 %v104_v57, %v100_v56  ;;  %v2726_v2 = vpack.c.bf16 %v106_v61, %v102_v60  ;;  %v117_v56 = vld [vmem:[#allocation2 + $0x150] sm:$0xff]  ;;  %v2461_v60 = vld [vmem:[#allocation5 + $0x1ac] ss:$16 sps:$4 sm:$0xff]  }
  0x73   :  { %1104 = vmatprep.subr.bf16.mxu1 %v2395_v3  ;;  %v2432_v3 = vld [vmem:[#allocation5 + $0x248] ss:$16 sps:$4 sm:$0xff]   ;;  %v121_v57 = vld [vmem:[#allocation2 + $0x170] sm:$0xff]  ;;  %v2464_v61 = vld [vmem:[#allocation5 + $0x3ac] ss:$16 sps:$4 sm:$0xff]  }
  0x74   :  { %v2479_v38 = vld [vmem:[#allocation5 + $0x14c] ss:$16 sps:$4 sm:$0xff]  }
  0x75   :  { %992 = vmatpush2.bf16.msra.mxu0 %v2397_v4  ;;  %v99_v4 = vld [vmem:[#allocation2 + $0xc0] sm:$0xff]  ;;  %v2482_v39 = vld [vmem:[#allocation5 + $0x34c] ss:$16 sps:$4 sm:$0xff]  }
  0x76   :  { %1105 = vmatpush2.bf16.msra.mxu1 %v2398_v5  ;;  %1187 = vmatprep.subr.bf16.mxu0 %v2401_v10  ;;  %v103_v5 = vld [vmem:[#allocation2 + $0xe0] sm:$0xff]  ;;  %v2435_v10 = vld [vmem:[#allocation5 + $0x28] ss:$16 sps:$4 sm:$0xff]  }
  0x77   :  { %1300 = vmatprep.subr.bf16.mxu1 %v2404_v11  ;;  %v2438_v11 = vld [vmem:[#allocation5 + $0x228] ss:$16 sps:$4 sm:$0xff]   ;;  %v2732_v14 = vpack.c.bf16 %v103_v5, %v99_v4  ;;  %v2758_v5 = vpack.c.bf16 %v121_v57, %v117_v56  ;;  %v2485_v56 = vld [vmem:[#allocation5 + $0x12c] ss:$16 sps:$4 sm:$0xff]  }
  0x78   :  { %994 = vmatmul.mubr.bf16.vlgmr.msra.gmra.mxu0 %v2696_v16  ;;  %v2488_v57 = vld [vmem:[#allocation5 + $0x32c] ss:$16 sps:$4 sm:$0xff]  }
  0x79   :  { %1107 = vmatmul.mubr.bf16.vlgmr.msra.gmra.mxu1 %v2698_v17  ;;  %1188 = vmatpush1.bf16.msra.mxu0 %v2399_v12  ;;  %v108_v12 = vld [vmem:[#allocation2 + $0x108] sm:$0xff] }
  0x7a   :  { %1301 = vmatpush1.bf16.msra.mxu1 %v2402_v13  ;;  %1189 = vmatprep.subr.bf16.mxu0 %v2407_v20  ;;  %v112_v13 = vld [vmem:[#allocation2 + $0x128] sm:$0xff] }
  0x7b   :  { %1302 = vmatprep.subr.bf16.mxu1 %v2410_v21  ;;  %1003 = vmatprep.mubr.bf16.mxu0 %v2700_v23  ;;  %v2443_v20 = vld [vmem:[#allocation5 + $0xc] ss:$16 sps:$4 sm:$0xff]  }
  0x7c   :  { %1116 = vmatprep.mubr.bf16.mxu1 %v2702_v24  ;;  %v2446_v21 = vld [vmem:[#allocation5 + $0x20c] ss:$16 sps:$4 sm:$0xff]  }
  0x7d   :  { %1190 = vmatpush1.bf16.msra.mxu0 %v2405_v22  ;;  %v2441_v22 = vld [vmem:[#allocation5 + $0x8] ss:$16 sps:$4 sm:$0xff]  }
  0x7e   :  { %1303 = vmatpush1.bf16.msra.mxu1 %v2408_v25  ;;  %1191 = vmatprep.subr.bf16.mxu0 %v2413_v30  ;;  %v2736_v25 = vpack.c.bf16 %v112_v13, %v108_v12  ;;  %v109_v30 = vld [vmem:[#allocation2 + $0x110] sm:$0xff]  ;;  %v2762_v13 = vpack.c.bf16 %v130_v7, %v126_v6  ;;  %v2489_v6 = vld [vmem:[#allocation5 + $0x108] ss:$16 sps:$4 sm:$0xff]  }
  0x7f   :  { %1304 = vmatprep.subr.bf16.mxu1 %v2416_v31  ;;  %v113_v31 = vld [vmem:[#allocation2 + $0x130] sm:$0xff]  ;;  %v2492_v7 = vld [vmem:[#allocation5 + $0x308] ss:$16 sps:$4 sm:$0xff]  }
  0x80   :  { %1004 = vmatmul.mubr.bf16.gmra.mxu0 %v2708_v36 }
  0x81   :  { %1117 = vmatmul.mubr.bf16.gmra.mxu1 %v2710_v37  ;;  %1192 = vmatpush1.bf16.msra.mxu0 %v2411_v32  ;;  %v2449_v32 = vld [vmem:[#allocation5 + $0x1ec] ss:$16 sps:$4 sm:$0xff]  }
  0x82   :  { %1305 = vmatpush1.bf16.msra.mxu1 %v2414_v33  ;;  %1193 = vmatprep.subr.bf16.mxu0 %v2419_v40  ;;  %v2452_v33 = vld [vmem:[#allocation5 + $0x3ec] ss:$16 sps:$4 sm:$0xff]   ;;  %v2744_v40 = vpack.c.bf16 %v111_v29, %v107_v28 }
  0x83   :  { %1306 = vmatprep.subr.bf16.mxu1 %v2422_v41  ;;  %1013 = vmatprep.mubr.bf16.mxu0 %v2712_v43  ;;  %v2746_v41 = vpack.c.bf16 %v113_v31, %v109_v30  ;;  %v132_v28 = vld [vmem:[#allocation2 + $0x1c8] sm:$0xff] }
  0x84   :  { %1126 = vmatprep.mubr.bf16.mxu1 %v2714_v44  ;;  %v136_v29 = vld [vmem:[#allocation2 + $0x1e8] sm:$0xff] }
  0x85   :  { %1194 = vmatpush1.bf16.msra.mxu0 %v2417_v42  ;;  %v118_v42 = vld [vmem:[#allocation2 + $0x158] sm:$0xff] }
  0x86   :  { %1307 = vmatpush1.bf16.msra.mxu1 %v2420_v45  ;;  %1195 = vmatprep.subr.bf16.mxu0 %v2425_v50  ;;  %v122_v45 = vld [vmem:[#allocation2 + $0x178] sm:$0xff] }
  0x87   :  { %1308 = vmatprep.subr.bf16.mxu1 %v2428_v51  ;;  %v2750_v50 = vpack.c.bf16 %v122_v45, %v118_v42  ;;  %v2456_v51 = vld [vmem:[#allocation5 + $0x3c8] ss:$16 sps:$4 sm:$0xff]  }
  0x88   :  { %1014 = vmatmul.mubr.bf16.gmra.mxu0 %v2720_v58  ;;  %v2471_v30 = vld [vmem:[#allocation5 + $0x168] ss:$16 sps:$4 sm:$0xff]  }
  0x89   :  { %1127 = vmatmul.mubr.bf16.gmra.mxu1 %v2722_v59  ;;  %1196 = vmatpush1.bf16.msra.mxu0 %v2423_v52  ;;  %v115_v52 = vld [vmem:[#allocation2 + $0x140] sm:$0xff]  ;;  %v2474_v31 = vld [vmem:[#allocation5 + $0x368] ss:$16 sps:$4 sm:$0xff]  }
  0x8a   :  { %1309 = vmatpush1.bf16.msra.mxu1 %v2426_v55  ;;  %1197 = vmatprep.subr.bf16.mxu0 %v2431_v62  ;;  %v119_v55 = vld [vmem:[#allocation2 + $0x160] sm:$0xff]  ;;  %v2459_v62 = vld [vmem:[#allocation5 + $0x1a8] ss:$16 sps:$4 sm:$0xff]  }
  0x8b   :  { %1310 = vmatprep.subr.bf16.mxu1 %v2434_v63  ;;  %1023 = vmatprep.mubr.bf16.mxu0 %v2724_v1  ;;  %v2462_v63 = vld [vmem:[#allocation5 + $0x3a8] ss:$16 sps:$4 sm:$0xff]   ;;  %v2756_v4 = vpack.c.bf16 %v119_v55, %v115_v52  ;;  %v133_v52 = vld [vmem:[#allocation2 + $0x1d0] sm:$0xff] }
  0x8c   :  { %1136 = vmatprep.mubr.bf16.mxu1 %v2726_v2  ;;  %v2477_v42 = vld [vmem:[#allocation5 + $0x148] ss:$16 sps:$4 sm:$0xff]   ;;  %v137_v55 = vld [vmem:[#allocation2 + $0x1f0] sm:$0xff] }
  0x8d   :  { %1198 = vmatpush1.bf16.msra.mxu0 %v2429_v0  ;;  %v124_v0 = vld [vmem:[#allocation2 + $0x188] sm:$0xff] }
  0x8e   :  { %1311 = vmatpush1.bf16.msra.mxu1 %v2432_v3  ;;  %1199 = vmatprep.subr.bf16.mxu0 %v2437_v8  ;;  %v128_v3 = vld [vmem:[#allocation2 + $0x1a8] sm:$0xff] }
  0x8f   :  { %1312 = vmatprep.subr.bf16.mxu1 %v2440_v9  ;;  %v2467_v8 = vld [vmem:[#allocation5 + $0x18c] ss:$16 sps:$4 sm:$0xff]   ;;  %v2760_v12 = vpack.c.bf16 %v128_v3, %v124_v0  ;;  %v2480_v45 = vld [vmem:[#allocation5 + $0x348] ss:$16 sps:$4 sm:$0xff]  }
  0x90   :  { %1024 = vmatmul.mubr.bf16.gmra.mxu0 %v2732_v14  ;;  %v2470_v9 = vld [vmem:[#allocation5 + $0x38c] ss:$16 sps:$4 sm:$0xff]  }
  0x91   :  { %1137 = vmatmul.mubr.bf16.gmra.mxu1 %v2734_v15  ;;  %1200 = vmatpush1.bf16.msra.mxu0 %v2435_v10  ;;  %v2465_v10 = vld [vmem:[#allocation5 + $0x188] ss:$16 sps:$4 sm:$0xff]   ;;  %v2491_v0 = vld [vmem:[#allocation5 + $0x10c] ss:$16 sps:$4 sm:$0xff]  }
  0x92   :  { %1313 = vmatpush1.bf16.msra.mxu1 %v2438_v11  ;;  %1201 = vmatprep.subr.bf16.mxu0 %v2443_v20  ;;  %v2468_v11 = vld [vmem:[#allocation5 + $0x388] ss:$16 sps:$4 sm:$0xff]   ;;  %v125_v20 = vld [vmem:[#allocation2 + $0x190] sm:$0xff]  ;;  %v2494_v3 = vld [vmem:[#allocation5 + $0x30c] ss:$16 sps:$4 sm:$0xff]  }
  0x93   :  { %1314 = vmatprep.subr.bf16.mxu1 %v2446_v21  ;;  %1033 = vmatprep.mubr.bf16.mxu0 %v2736_v25  ;;  %v129_v21 = vld [vmem:[#allocation2 + $0x1b0] sm:$0xff] }
  0x94   :  { %1146 = vmatprep.mubr.bf16.mxu1 %v2738_v26 }
  0x95   :  { %1202 = vmatpush1.bf16.msra.mxu0 %v2441_v22  ;;  %v2473_v22 = vld [vmem:[#allocation5 + $0x16c] ss:$16 sps:$4 sm:$0xff]  }
  0x96   :  { %1315 = vmatpush1.bf16.msra.mxu1 %v2444_v27  ;;  %1203 = vmatprep.subr.bf16.mxu0 %v2449_v32  ;;  %v2476_v27 = vld [vmem:[#allocation5 + $0x36c] ss:$16 sps:$4 sm:$0xff]  }
  0x97   :  { %1316 = vmatprep.subr.bf16.mxu1 %v2452_v33  ;;  %v134_v32 = vld [vmem:[#allocation2 + $0x1d8] sm:$0xff]  ;;  %v2768_v33 = vpack.c.bf16 %v127_v19, %v123_v18  ;;  %v2499_v18 = vld [vmem:[#allocation8 + $0x68] sm:$0xff]  }
  0x98   :  { %1034 = vmatmul.mubr.bf16.gmra.mxu0 %v2744_v40  ;;  %v2512_v19 = vld [vmem:[#allocation8 + $0xb8] sm:$0xff]  }
  0x99   :  { %1147 = vmatmul.mubr.bf16.gmra.mxu1 %v2746_v41  ;;  %1204 = vmatpush2.bf16.msra.mxu0 %v2447_v34  ;;  %v2770_v34 = vpack.c.bf16 %v129_v21, %v125_v20  ;;  %v2509_v20 = vld [vmem:[#allocation8 + $0x40] sm:$0xff]  }
  0x9a   :  { %1317 = vmatpush2.bf16.msra.mxu1 %v2450_v35  ;;  %1205 = vmatprep.subr.bf16.mxu0 %v2455_v46  ;;  %v138_v35 = vld [vmem:[#allocation2 + $0x1f8] sm:$0xff]  ;;  %v2772_v46 = vpack.c.bf16 %v136_v29, %v132_v28  ;;  %v2822_v28 = vld [vmem:[#allocation7] sm:$0xf] }
  0x9b   :  { %1318 = vmatprep.subr.bf16.mxu1 %v2458_v47  ;;  %1043 = vmatprep.mubr.bf16.mxu0 %v2748_v49  ;;  %v2774_v47 = vpack.c.bf16 %v138_v35, %v134_v32 }
  0x9c   :  { %1156 = vmatprep.mubr.bf16.mxu1 %v2750_v50 }
  0x9d   :  { %1206 = vmatpush2.bf16.msra.mxu0 %v2453_v48  ;;  %v131_v48 = vld [vmem:[#allocation2 + $0x1c0] sm:$0xff] }
  0x9e   :  { %1319 = vmatpush2.bf16.msra.mxu1 %v2456_v51  ;;  %1207 = vmatprep.subr.bf16.mxu0 %v2461_v60  ;;  %v135_v51 = vld [vmem:[#allocation2 + $0x1e0] sm:$0xff]  ;;  %v2483_v60 = vld [vmem:[#allocation5 + $0x128] ss:$16 sps:$4 sm:$0xff]  }
  0x9f   :  { %1320 = vmatprep.subr.bf16.mxu1 %v2464_v61  ;;  %v2486_v61 = vld [vmem:[#allocation5 + $0x328] ss:$16 sps:$4 sm:$0xff]  }
  0xa0   :  { %1044 = vmatmul.mubr.bf16.gmra.mxu0 %v2756_v4 }
  0xa1   :  { %1157 = vmatmul.mubr.bf16.gmra.mxu1 %v2758_v5  ;;  %1208 = vmatpush2.bf16.msra.mxu0 %v2459_v62  ;;  %v2780_v62 = vpack.c.bf16 %v135_v51, %v131_v48 }
  0xa2   :  { %1321 = vmatpush2.bf16.msra.mxu1 %v2462_v63  ;;  %1209 = vmatprep.subr.bf16.mxu0 %v2467_v8  ;;  %v2782_v63 = vpack.c.bf16 %v137_v55, %v133_v52  ;;  %v2495_v8 = vld [vmem:[#allocation8 + $0x78] sm:$0xff]  }
  0xa3   :  { %1322 = vmatprep.subr.bf16.mxu1 %v2470_v9  ;;  %1053 = vmatprep.mubr.bf16.mxu0 %v2760_v12  ;;  %v2496_v9 = vld [vmem:[#allocation8 + $0x38] sm:$0xff]  }
  0xa4   :  { %1166 = vmatprep.mubr.bf16.mxu1 %v2762_v13 }
  0xa5   :  { %1210 = vmatpush2.bf16.msra.mxu0 %v2465_v10  ;;  %v2497_v10 = vld [vmem:[#allocation8 + $0x70] sm:$0xff]  }
  0xa6   :  { %1323 = vmatpush2.bf16.msra.mxu1 %v2468_v11  ;;  %1211 = vmatprep.subr.bf16.mxu0 %v2473_v22  ;;  %v2498_v11 = vld [vmem:[#allocation8 + $0x30] sm:$0xff]  }
  0xa7   :  { %1324 = vmatprep.subr.bf16.mxu1 %v2476_v27 }
  0xa8   :  { %1054 = vmatmul.mubr.bf16.gmra.mxu0 %v2768_v33 }
  0xa9   :  { %1167 = vmatmul.mubr.bf16.gmra.mxu1 %v2770_v34  ;;  %1212 = vmatpush2.bf16.msra.mxu0 %v2471_v30 }
  0xaa   :  { %1325 = vmatpush2.bf16.msra.mxu1 %v2474_v31  ;;  %1213 = vmatprep.subr.bf16.mxu0 %v2479_v38 }
  0xab   :  { %1326 = vmatprep.subr.bf16.mxu1 %v2482_v39  ;;  %1063 = vmatprep.mubr.bf16.mxu0 %v2772_v46 }
  0xac   :  { %1176 = vmatprep.mubr.bf16.mxu1 %v2774_v47 }
  0xad   :  { %1214 = vmatpush2.bf16.msra.mxu0 %v2477_v42 }
  0xae   :  { %1327 = vmatpush2.bf16.msra.mxu1 %v2480_v45  ;;  %1215 = vmatprep.subr.bf16.mxu0 %v2485_v56 }
  0xaf   :  { %1328 = vmatprep.subr.bf16.mxu1 %v2488_v57 }
  0xb0   :  { %1064 = vmatmul.mubr.bf16.gmra.mxu0 %v2780_v62 }
  0xb1   :  { %1177 = vmatmul.mubr.bf16.gmra.mxu1 %v2782_v63  ;;  %1216 = vmatpush2.bf16.msra.mxu0 %v2483_v60 }
  0xb2   :  { %1329 = vmatpush2.bf16.msra.mxu1 %v2486_v61  ;;  %1217 = vmatprep.subr.bf16.mxu0 %v2491_v0 }
  0xb3   :  { %1330 = vmatprep.subr.bf16.mxu1 %v2494_v3  ;;  %1219 = vmatprep.mubr.bf16.mxu0 %v2690_v53  ;;  %v2500_v53 = vld [vmem:[#allocation8 + $0x28] sm:$0xff]  }
  0xb4   :  { %1332 = vmatprep.mubr.bf16.mxu1 %v2692_v54  ;;  %v2501_v54 = vld [vmem:[#allocation8 + $0x60] sm:$0xff]  }
  0xb5   :  { %1218 = vmatpush2.bf16.msra.mxu0 %v2489_v6 }
  0xb6   :  { %1331 = vmatpush2.bf16.msra.mxu1 %v2492_v7  ;;  %2162 = vmatprep.subr.bf16.mxu0 %v2495_v8 }
  0xb8   :  { %1220 = vmatmul.mubr.bf16.vlgmr.msra.gmra.mxu0 %v2696_v16  ;;  %v2502_v16 = vld [vmem:[#allocation8 + $0x20] sm:$0xff]  }
  0xb9   :  { %1333 = vmatmul.mubr.bf16.vlgmr.msra.gmra.mxu1 %v2698_v17  ;;  %1229 = vmatprep.mubr.bf16.mxu0 %v2700_v23  ;;  %v2503_v17 = vld [vmem:[#allocation8 + $0x58] sm:$0xff]  }
  0xba   :  { %1342 = vmatprep.mubr.bf16.mxu1 %v2702_v24  ;;  %2163 = vmatpush3.bf16.msra.mxu0 %v2496_v9  ;;  %v2504_v23 = vld [vmem:[#allocation8 + $0x18] sm:$0xff]   ;;  %v2505_v24 = vld [vmem:[#allocation8 + $0x50] sm:$0xff]  }
  0xbb   :  { %2164 = vmatprep.subr.bf16.mxu0 %v2497_v10 }
  0xbe   :  { %2165 = vmatpush3.bf16.msra.mxu0 %v2498_v11 }
  0xbf   :  { %2166 = vmatprep.subr.bf16.mxu0 %v2499_v18 }
  0xc0   :  { %1230 = vmatmul.mubr.bf16.gmra.mxu0 %v2708_v36  ;;  %v2506_v36 = vld [vmem:[#allocation8 + $0x10] sm:$0xff]  }
  0xc1   :  { %1343 = vmatmul.mubr.bf16.gmra.mxu1 %v2710_v37  ;;  %1239 = vmatprep.mubr.bf16.mxu0 %v2712_v43  ;;  %v2507_v37 = vld [vmem:[#allocation8 + $0x48] sm:$0xff]   ;;  %v2511_v43 = vld [vmem:[#allocation8 + $0xf8] sm:$0xff]  }
  0xc2   :  { %1352 = vmatprep.mubr.bf16.mxu1 %v2714_v44  ;;  %2167 = vmatpush3.bf16.msra.mxu0 %v2500_v53  ;;  %v2508_v44 = vld [vmem:[#allocation8 + $0x8] sm:$0xff]  }
  0xc3   :  { %2168 = vmatprep.subr.bf16.mxu0 %v2501_v54  ;;  %2226 = vmatprep.subr.bf16.mxu1 %v2511_v43 }
  0xc4   :  { %2227 = vmatpush3.bf16.msra.mxu1 %v2512_v19 }
  0xc6   :  { %2169 = vmatpush3.bf16.msra.mxu0 %v2502_v16 }
  0xc7   :  { %2170 = vmatprep.subr.bf16.mxu0 %v2503_v17 }
  0xc8   :  { %1240 = vmatmul.mubr.bf16.gmra.mxu0 %v2720_v58  ;;  %v2510_v58 = vld [vmem:[#allocation8] sm:$0xff]  }
  0xc9   :  { %1353 = vmatmul.mubr.bf16.gmra.mxu1 %v2722_v59  ;;  %1249 = vmatprep.mubr.bf16.mxu0 %v2724_v1  ;;  %v2513_v59 = vld [vmem:[#allocation8 + $0xf0] sm:$0xff]  }
  0xca   :  { %1362 = vmatprep.mubr.bf16.mxu1 %v2726_v2  ;;  %2171 = vmatpush3.bf16.msra.mxu0 %v2504_v23  ;;  %v2514_v1 = vld [vmem:[#allocation8 + $0xb0] sm:$0xff]   ;;  %v2515_v2 = vld [vmem:[#allocation8 + $0xe8] sm:$0xff]  }
  0xcb   :  { %2172 = vmatprep.subr.bf16.mxu0 %v2505_v24  ;;  %2228 = vmatprep.subr.bf16.mxu1 %v2513_v59 }
  0xcc   :  { %2229 = vmatpush3.bf16.msra.mxu1 %v2514_v1 }
  0xcd   :  { %2230 = vmatprep.subr.bf16.mxu1 %v2515_v2 }
  0xce   :  { %2173 = vmatpush3.bf16.msra.mxu0 %v2506_v36 }
  0xcf   :  { %2174 = vmatprep.subr.bf16.mxu0 %v2507_v37 }
  0xd0   :  { %1250 = vmatmul.mubr.bf16.gmra.mxu0 %v2732_v14  ;;  %v2516_v14 = vld [vmem:[#allocation8 + $0xa8] sm:$0xff]  }
  0xd1   :  { %1363 = vmatmul.mubr.bf16.gmra.mxu1 %v2734_v15  ;;  %1259 = vmatprep.mubr.bf16.mxu0 %v2736_v25  ;;  %v2517_v15 = vld [vmem:[#allocation8 + $0xe0] sm:$0xff]  }
  0xd2   :  { %1372 = vmatprep.mubr.bf16.mxu1 %v2738_v26  ;;  %2175 = vmatpush3.bf16.msra.mxu0 %v2508_v44  ;;  %v2518_v25 = vld [vmem:[#allocation8 + $0xa0] sm:$0xff]   ;;  %v2519_v26 = vld [vmem:[#allocation8 + $0xd8] sm:$0xff]  }
  0xd3   :  { %2176 = vmatprep.subr.bf16.mxu0 %v2509_v20  ;;  %2231 = vmatpush3.bf16.msra.mxu1 %v2516_v14 }
  0xd4   :  { %2232 = vmatprep.subr.bf16.mxu1 %v2517_v15 }
  0xd6   :  { %2177 = vmatpush3.bf16.msra.mxu0 %v2510_v58 }
  0xd7   :  { %2233 = vmatpush3.bf16.msra.mxu1 %v2518_v25 }
  0xd8   :  { %1260 = vmatmul.mubr.bf16.gmra.mxu0 %v2744_v40  ;;  %v2520_v40 = vld [vmem:[#allocation8 + $0x98] sm:$0xff]   ;;  %2234 = vmatprep.subr.bf16.mxu1 %v2519_v26 }
  0xd9   :  { %1373 = vmatmul.mubr.bf16.gmra.mxu1 %v2746_v41  ;;  %1269 = vmatprep.mubr.bf16.mxu0 %v2748_v49  ;;  %v2521_v41 = vld [vmem:[#allocation8 + $0xd0] sm:$0xff]  }
  0xda   :  { %1382 = vmatprep.mubr.bf16.mxu1 %v2750_v50  ;;  %v2522_v49 = vld [vmem:[#allocation8 + $0x90] sm:$0xff]   ;;  %v2523_v50 = vld [vmem:[#allocation8 + $0xc8] sm:$0xff]  }
  0xdb   :  { %2235 = vmatpush3.bf16.msra.mxu1 %v2520_v40 }
  0xdc   :  { %2236 = vmatprep.subr.bf16.mxu1 %v2521_v41 }
  0xdf   :  { %2237 = vmatpush3.bf16.msra.mxu1 %v2522_v49 }
  0xe0   :  { %1270 = vmatmul.mubr.bf16.gmra.mxu0 %v2756_v4  ;;  %v2524_v4 = vld [vmem:[#allocation8 + $0x88] sm:$0xff]   ;;  %2238 = vmatprep.subr.bf16.mxu1 %v2523_v50 }
  0xe1   :  { %1383 = vmatmul.mubr.bf16.gmra.mxu1 %v2758_v5  ;;  %1279 = vmatprep.mubr.bf16.mxu0 %v2760_v12  ;;  %v2525_v5 = vld [vmem:[#allocation8 + $0xc0] sm:$0xff]  }
  0xe2   :  { %1392 = vmatprep.mubr.bf16.mxu1 %v2762_v13  ;;  %v2526_v12 = vld [vmem:[#allocation8 + $0x80] sm:$0xff]   ;;  %v301_v13 = vlaneseq }
  0xe3   :  { %2239 = vmatpush3.bf16.msra.mxu1 %v2524_v4 }
  0xe4   :  { %2240 = vmatprep.subr.bf16.mxu1 %v2525_v5  ;;  %v2818_v21 = vshrl.u32 %v301_v13, 7 }
  0xe6   :  { %v307_v22 = vsub.s32 1, %v2818_v21  ;;  %v303_v27 = vsub.s32 0, %v2818_v21 }
  0xe7   :  { %2241 = vmatpush3.bf16.msra.mxu1 %v2526_v12 }
  0xe8   :  { %1280 = vmatmul.mubr.bf16.gmra.mxu0 %v2768_v33  ;;  %v2825_v29 = vrot.slane %v2822_v28, %v307_v22  ;;  %v2828_v30 = vrot.slane %v2822_v28, %v303_v27 }
  0xe9   :  { %1393 = vmatmul.mubr.bf16.gmra.mxu1 %v2770_v34  ;;  %1289 = vmatprep.mubr.bf16.mxu0 %v2772_v46 }
  0xea   :  { %1402 = vmatprep.mubr.bf16.mxu1 %v2774_v47 }
  0xf0   :  { %1290 = vmatmul.mubr.bf16.gmra.mxu0 %v2780_v62 }
  0xf1   :  { %1403 = vmatmul.mubr.bf16.gmra.mxu1 %v2782_v63 }
 0x138   :  { %v995_v31 = vpop.f32.mrf.mxu0 }
 0x139   :  { %v1108_v32 = vpop.f32.mrf.mxu1  ;;  %v996_v38 = vadd.f32 %v995_v31, %v2828_v30 }
 0x13a   :  { %v997_v33 = vpop.f32.mrf.mxu0 }
 0x13b   :  { %v1110_v34 = vpop.f32.mrf.mxu1  ;;  %v998_v35 = vadd.f32 %v997_v33, %v2825_v29  ;;  %v1109_v55 = vadd.f32 %v1108_v32, %v996_v38 }
 0x13c   :  { %v999_v39 = vpop.f32.mrf.mxu0 }
 0x13d   :  { %v1112_v42 = vpop.f32.mrf.mxu1  ;;  %v1000_v45 = vadd.f32 %v999_v39, %v2828_v30  ;;  %v1111_v48 = vadd.f32 %v1110_v34, %v998_v35  ;;  %v1413_v7 = vmax.f32 %v1109_v55, 0.0 }
 0x13e   :  { %v1001_v46 = vpop.f32.mrf.mxu0 }
 0x13f   :  { %v1114_v47 = vpop.f32.mrf.mxu1  ;;  %v1113_v51 = vadd.f32 %v1112_v42, %v1000_v45  ;;  %v1002_v52 = vadd.f32 %v1001_v46, %v2825_v29  ;;  %v1414_v0 = vmax.f32 %v1111_v48, 0.0 }
 0x140   :  { %v1005_v56 = vpop.f32.mrf.mxu0 }
 0x141   :  { %v1118_v57 = vpop.f32.mrf.mxu1  ;;  %v1115_v60 = vadd.f32 %v1114_v47, %v1002_v52  ;;  %v1417_v61 = vmax.f32 %v1113_v51, 0.0  ;;  %v1006_v8 = vadd.f32 %v1005_v56, %v2828_v30 }
 0x142   :  { %v1007_v62 = vpop.f32.mrf.mxu0 }
 0x143   :  { %v1120_v63 = vpop.f32.mrf.mxu1  ;;  %v1418_v3 = vmax.f32 %v1115_v60, 0.0  ;;  %v1008_v6 = vadd.f32 %v1007_v62, %v2825_v29  ;;  %v1477_v53 = vpack.c.bf16 %v1417_v61, %v1413_v7  ;;  %v1119_v36 = vadd.f32 %v1118_v57, %v1006_v8 }
 0x144   :  { %v1009_v9 = vpop.f32.mrf.mxu0 }
 0x145   :  { %v1122_v10 = vpop.f32.mrf.mxu1  ;;  %v1478_v11 = vpack.c.bf16 %v1418_v3, %v1414_v0  ;;  %v1010_v18 = vadd.f32 %v1009_v9, %v2828_v30  ;;  %v1121_v17 = vadd.f32 %v1120_v63, %v1008_v6  ;;  %v1421_v14 = vmax.f32 %v1119_v36, 0.0 }
 0x146   :  { %v1011_v54 = vpop.f32.mrf.mxu0 }
 0x147   :  { %v1124_v16 = vpop.f32.mrf.mxu1  ;;  %v1123_v23 = vadd.f32 %v1122_v10, %v1010_v18  ;;  %v1012_v24 = vadd.f32 %v1011_v54, %v2825_v29  ;;  %1804 = vmatprep.mubr.bf16.mxu0 %v1478_v11  ;;  %v1422_v59 = vmax.f32 %v1121_v17, 0.0 }
 0x148   :  { %v1015_v37 = vpop.f32.mrf.mxu0  ;;  %1805 = vmatmul.mubr.bf16.vlgmr.msra.gmra.mxu0 %v1477_v53 }
 0x149   :  { %v1128_v43 = vpop.f32.mrf.mxu1  ;;  %v1125_v44 = vadd.f32 %v1124_v16, %v1012_v24  ;;  %v1425_v19 = vmax.f32 %v1123_v23, 0.0  ;;  %v1016_v15 = vadd.f32 %v1015_v37, %v2828_v30 }
 0x14a   :  { %v1017_v20 = vpop.f32.mrf.mxu0 }
 0x14b   :  { %v1130_v58 = vpop.f32.mrf.mxu1  ;;  %v1426_v1 = vmax.f32 %v1125_v44, 0.0  ;;  %v1018_v2 = vadd.f32 %v1017_v20, %v2825_v29  ;;  %v1481_v49 = vpack.c.bf16 %v1425_v19, %v1421_v14  ;;  %v1129_v22 = vadd.f32 %v1128_v43, %v1016_v15 }
 0x14c   :  { %v1019_v25 = vpop.f32.mrf.mxu0 }
 0x14d   :  { %v1132_v26 = vpop.f32.mrf.mxu1  ;;  %v1482_v40 = vpack.c.bf16 %v1426_v1, %v1422_v59  ;;  %v1020_v41 = vadd.f32 %v1019_v25, %v2828_v30  ;;  %v1131_v5 = vadd.f32 %v1130_v58, %v1018_v2  ;;  %v1429_v45 = vmax.f32 %v1129_v22, 0.0 }
 0x14e   :  { %v1021_v50 = vpop.f32.mrf.mxu0 }
 0x14f   :  { %v1134_v4 = vpop.f32.mrf.mxu1  ;;  %v1133_v12 = vadd.f32 %v1132_v26, %v1020_v41  ;;  %v1022_v13 = vadd.f32 %v1021_v50, %v2825_v29  ;;  %1812 = vmatprep.mubr.bf16.mxu0 %v1482_v40  ;;  %v1430_v38 = vmax.f32 %v1131_v5, 0.0 }
 0x150   :  { %v1025_v27 = vpop.f32.mrf.mxu0  ;;  %1813 = vmatmul.mubr.bf16.gmra.mxu0 %v1481_v49 }
 0x151   :  { %v1138_v31 = vpop.f32.mrf.mxu1  ;;  %v1135_v32 = vadd.f32 %v1134_v4, %v1022_v13  ;;  %v1433_v33 = vmax.f32 %v1133_v12, 0.0  ;;  %v1026_v46 = vadd.f32 %v1025_v27, %v2828_v30 }
 0x152   :  { %v1027_v34 = vpop.f32.mrf.mxu0 }
 0x153   :  { %v1140_v35 = vpop.f32.mrf.mxu1  ;;  %v1434_v39 = vmax.f32 %v1135_v32, 0.0  ;;  %v1028_v42 = vadd.f32 %v1027_v34, %v2825_v29  ;;  %v1485_v55 = vpack.c.bf16 %v1433_v33, %v1429_v45  ;;  %v1139_v63 = vadd.f32 %v1138_v31, %v1026_v46 }
 0x154   :  { %v1029_v47 = vpop.f32.mrf.mxu0 }
 0x155   :  { %v1142_v48 = vpop.f32.mrf.mxu1  ;;  %v1486_v51 = vpack.c.bf16 %v1434_v39, %v1430_v38  ;;  %v1030_v52 = vadd.f32 %v1029_v47, %v2828_v30  ;;  %v1141_v60 = vadd.f32 %v1140_v35, %v1028_v42  ;;  %v1437_v53 = vmax.f32 %v1139_v63, 0.0 }
 0x156   :  { %v1031_v56 = vpop.f32.mrf.mxu0 }
 0x157   :  { %v1144_v57 = vpop.f32.mrf.mxu1  ;;  %v1143_v61 = vadd.f32 %v1142_v48, %v1030_v52  ;;  %v1032_v62 = vadd.f32 %v1031_v56, %v2825_v29  ;;  %1820 = vmatprep.mubr.bf16.mxu0 %v1486_v51  ;;  %v1438_v10 = vmax.f32 %v1141_v60, 0.0 }
 0x158   :  { %v1035_v0 = vpop.f32.mrf.mxu0  ;;  %1821 = vmatmul.mubr.bf16.gmra.mxu0 %v1485_v55 }
 0x159   :  { %v1148_v3 = vpop.f32.mrf.mxu1  ;;  %v1145_v6 = vadd.f32 %v1144_v57, %v1032_v62  ;;  %v1441_v7 = vmax.f32 %v1143_v61, 0.0  ;;  %v1036_v54 = vadd.f32 %v1035_v0, %v2828_v30 }
 0x15a   :  { %v1037_v8 = vpop.f32.mrf.mxu0 }
 0x15b   :  { %v1150_v9 = vpop.f32.mrf.mxu1  ;;  %v1442_v11 = vmax.f32 %v1145_v6, 0.0  ;;  %v1038_v18 = vadd.f32 %v1037_v8, %v2825_v29  ;;  %v1489_v36 = vpack.c.bf16 %v1441_v7, %v1437_v53  ;;  %v1149_v58 = vadd.f32 %v1148_v3, %v1036_v54 }
 0x15c   :  { %v1039_v16 = vpop.f32.mrf.mxu0 }
 0x15d   :  { %v1152_v17 = vpop.f32.mrf.mxu1  ;;  %v1490_v23 = vpack.c.bf16 %v1442_v11, %v1438_v10  ;;  %v1040_v24 = vadd.f32 %v1039_v16, %v2828_v30  ;;  %v1151_v44 = vadd.f32 %v1150_v9, %v1038_v18  ;;  %v1445_v49 = vmax.f32 %v1149_v58, 0.0 }
 0x15e   :  { %v1041_v37 = vpop.f32.mrf.mxu0 }
 0x15f   :  { %v1154_v43 = vpop.f32.mrf.mxu1  ;;  %v1153_v19 = vadd.f32 %v1152_v17, %v1040_v24  ;;  %v1042_v20 = vadd.f32 %v1041_v37, %v2825_v29  ;;  %1828 = vmatprep.mubr.bf16.mxu0 %v1490_v23  ;;  %v1446_v26 = vmax.f32 %v1151_v44, 0.0 }
 0x160   :  { %v1045_v59 = vpop.f32.mrf.mxu0  ;;  %1829 = vmatmul.mubr.bf16.gmra.mxu0 %v1489_v36  ;;  %v315_v36 = vsub.s32 3, %v2818_v21 }
 0x161   :  { %v1158_v1 = vpop.f32.mrf.mxu1  ;;  %v1155_v2 = vadd.f32 %v1154_v43, %v1042_v20  ;;  %v1449_v14 = vmax.f32 %v1153_v19, 0.0  ;;  %v1046_v50 = vadd.f32 %v1045_v59, %v2828_v30  ;;  %v311_v20 = vsub.s32 2, %v2818_v21 }
 0x162   :  { %v1047_v15 = vpop.f32.mrf.mxu0 }
 0x163   :  { %v1160_v25 = vpop.f32.mrf.mxu1  ;;  %v1450_v40 = vmax.f32 %v1155_v2, 0.0  ;;  %v1048_v41 = vadd.f32 %v1047_v15, %v2825_v29  ;;  %v1493_v22 = vpack.c.bf16 %v1449_v14, %v1445_v49  ;;  %v1159_v35 = vadd.f32 %v1158_v1, %v1046_v50 }
 0x164   :  { %v1049_v4 = vpop.f32.mrf.mxu0  ;;  %v2868_v49 = vrot.slane %v2822_v28, %v311_v20 }
 0x165   :  { %v1162_v5 = vpop.f32.mrf.mxu1  ;;  %v1494_v12 = vpack.c.bf16 %v1450_v40, %v1446_v26  ;;  %v1050_v13 = vadd.f32 %v1049_v4, %v2828_v30  ;;  %v1161_v32 = vadd.f32 %v1160_v25, %v1048_v41  ;;  %v1453_v55 = vmax.f32 %v1159_v35, 0.0 }
 0x166   :  { %v1051_v27 = vpop.f32.mrf.mxu0  ;;  %v2865_v40 = vrot.slane %v2822_v28, %v315_v36 }
 0x167   :  { %v1164_v31 = vpop.f32.mrf.mxu1  ;;  %v1163_v33 = vadd.f32 %v1162_v5, %v1050_v13  ;;  %v1052_v34 = vadd.f32 %v1051_v27, %v2825_v29  ;;  %1836 = vmatprep.mubr.bf16.mxu0 %v1494_v12  ;;  %v1454_v48 = vmax.f32 %v1161_v32, 0.0 }
 0x168   :  { %v1055_v38 = vpop.f32.mrf.mxu0  ;;  %1837 = vmatmul.mubr.bf16.gmra.mxu0 %v1493_v22 }
 0x169   :  { %v1168_v39 = vpop.f32.mrf.mxu1  ;;  %v1165_v42 = vadd.f32 %v1164_v31, %v1052_v34  ;;  %v1457_v45 = vmax.f32 %v1163_v33, 0.0  ;;  %v1056_v56 = vadd.f32 %v1055_v38, %v2828_v30 }
 0x16a   :  { %v1057_v46 = vpop.f32.mrf.mxu0 }
 0x16b   :  { %v1170_v47 = vpop.f32.mrf.mxu1  ;;  %v1458_v51 = vmax.f32 %v1165_v42, 0.0  ;;  %v1058_v52 = vadd.f32 %v1057_v46, %v2825_v29  ;;  %v1497_v63 = vpack.c.bf16 %v1457_v45, %v1453_v55  ;;  %v1169_v9 = vadd.f32 %v1168_v39, %v1056_v56 }
 0x16c   :  { %v1059_v57 = vpop.f32.mrf.mxu0 }
 0x16d   :  { %v1172_v60 = vpop.f32.mrf.mxu1  ;;  %v1498_v61 = vpack.c.bf16 %v1458_v51, %v1454_v48  ;;  %v1060_v62 = vadd.f32 %v1059_v57, %v2828_v30  ;;  %v1171_v6 = vadd.f32 %v1170_v47, %v1058_v52  ;;  %v1461_v37 = vmax.f32 %v1169_v9, 0.0 }
 0x16e   :  { %v1061_v0 = vpop.f32.mrf.mxu0 }
 0x16f   :  { %v1174_v3 = vpop.f32.mrf.mxu1  ;;  %v1173_v7 = vadd.f32 %v1172_v60, %v1060_v62  ;;  %v1062_v8 = vadd.f32 %v1061_v0, %v2825_v29  ;;  %1844 = vmatprep.mubr.bf16.mxu0 %v1498_v61  ;;  %v1462_v17 = vmax.f32 %v1171_v6, 0.0 }
 0x170   :  { %v1065_v10 = vpop.f32.mrf.mxu0  ;;  %1845 = vmatmul.mubr.bf16.gmra.mxu0 %v1497_v63 }
 0x171   :  { %v1178_v11 = vpop.f32.mrf.mxu1  ;;  %v1175_v18 = vadd.f32 %v1174_v3, %v1062_v8  ;;  %v1465_v53 = vmax.f32 %v1173_v7, 0.0  ;;  %v1066_v43 = vadd.f32 %v1065_v10, %v2828_v30 }
 0x172   :  { %v1067_v54 = vpop.f32.mrf.mxu0 }
 0x173   :  { %v1180_v16 = vpop.f32.mrf.mxu1  ;;  %v1466_v23 = vmax.f32 %v1175_v18, 0.0  ;;  %v1068_v24 = vadd.f32 %v1067_v54, %v2825_v29  ;;  %v1501_v1 = vpack.c.bf16 %v1465_v53, %v1461_v37  ;;  %v1179_v41 = vadd.f32 %v1178_v11, %v1066_v43 }
 0x174   :  { %v1069_v44 = vpop.f32.mrf.mxu0 }
 0x175   :  { %v1182_v19 = vpop.f32.mrf.mxu1  ;;  %v1502_v58 = vpack.c.bf16 %v1466_v23, %v1462_v17  ;;  %v1070_v59 = vadd.f32 %v1069_v44, %v2828_v30  ;;  %v1181_v15 = vadd.f32 %v1180_v16, %v1068_v24 }
 0x176   :  { %v1071_v2 = vpop.f32.mrf.mxu0 }
 0x177   :  { %v1184_v14 = vpop.f32.mrf.mxu1  ;;  %v1183_v25 = vadd.f32 %v1182_v19, %v1070_v59  ;;  %v1072_v26 = vadd.f32 %v1071_v2, %v2825_v29  ;;  %1852 = vmatprep.mubr.bf16.mxu0 %v1502_v58  ;;  %v1470_v13 = vmax.f32 %v1181_v15, 0.0  ;;  %v1469_v29 = vmax.f32 %v1179_v41, 0.0 }
 0x178   :  { %v1221_v50 = vpop.f32.mrf.mxu0  ;;  %1853 = vmatmul.mubr.bf16.gmra.mxu0 %v1501_v1 }
 0x179   :  { %v1334_v21 = vpop.f32.mrf.mxu1  ;;  %v1185_v4 = vadd.f32 %v1184_v14, %v1072_v26  ;;  %v1473_v30 = vmax.f32 %v1183_v25, 0.0  ;;  %v1222_v31 = vadd.f32 %v1221_v50, %v2868_v49 }
 0x17a   :  { %v1223_v5 = vpop.f32.mrf.mxu0 }
 0x17b   :  { %v1336_v12 = vpop.f32.mrf.mxu1  ;;  %v1474_v22 = vmax.f32 %v1185_v4, 0.0  ;;  %v1224_v27 = vadd.f32 %v1223_v5, %v2865_v40  ;;  %v1505_v35 = vpack.c.bf16 %v1473_v30, %v1469_v29  ;;  %v1335_v47 = vadd.f32 %v1334_v21, %v1222_v31 }
 0x17c   :  { %v1225_v32 = vpop.f32.mrf.mxu0 }
 0x17d   :  { %v1338_v33 = vpop.f32.mrf.mxu1  ;;  %v1506_v34 = vpack.c.bf16 %v1474_v22, %v1470_v13  ;;  %v1226_v28 = vadd.f32 %v1225_v32, %v2868_v49  ;;  %v1337_v42 = vadd.f32 %v1336_v12, %v1224_v27  ;;  %v1415_v63 = vmax.f32 %v1335_v47, 0.0 }
 0x17e   :  { %v1227_v38 = vpop.f32.mrf.mxu0 }
 0x17f   :  { %v1340_v39 = vpop.f32.mrf.mxu1  ;;  %v1339_v45 = vadd.f32 %v1338_v33, %v1226_v28  ;;  %v1228_v46 = vadd.f32 %v1227_v38, %v2865_v40  ;;  %1860 = vmatprep.mubr.bf16.mxu0 %v1506_v34  ;;  %v1416_v60 = vmax.f32 %v1337_v42, 0.0 }
 0x180   :  { %v1231_v48 = vpop.f32.mrf.mxu0  ;;  %1861 = vmatmul.mubr.bf16.gmra.mxu0 %v1505_v35 }
 0x181   :  { %v1344_v51 = vpop.f32.mrf.mxu1  ;;  %v1341_v52 = vadd.f32 %v1340_v39, %v1228_v46  ;;  %v1419_v55 = vmax.f32 %v1339_v45, 0.0  ;;  %v1232_v0 = vadd.f32 %v1231_v48, %v2868_v49 }
 0x182   :  { %v1233_v56 = vpop.f32.mrf.mxu0 }
 0x183   :  { %v1346_v57 = vpop.f32.mrf.mxu1  ;;  %v1420_v61 = vmax.f32 %v1341_v52, 0.0  ;;  %v1234_v62 = vadd.f32 %v1233_v56, %v2865_v40  ;;  %v1479_v9 = vpack.c.bf16 %v1419_v55, %v1415_v63  ;;  %v1345_v16 = vadd.f32 %v1344_v51, %v1232_v0 }
 0x184   :  { %v1235_v3 = vpop.f32.mrf.mxu0 }
 0x185   :  { %v1348_v6 = vpop.f32.mrf.mxu1  ;;  %v1480_v7 = vpack.c.bf16 %v1420_v61, %v1416_v60  ;;  %v1236_v8 = vadd.f32 %v1235_v3, %v2868_v49  ;;  %v1347_v18 = vadd.f32 %v1346_v57, %v1234_v62  ;;  %v1423_v58 = vmax.f32 %v1345_v16, 0.0 }
 0x186   :  { %v1237_v10 = vpop.f32.mrf.mxu0 }
 0x187   :  { %v1350_v11 = vpop.f32.mrf.mxu1  ;;  %v1349_v53 = vadd.f32 %v1348_v6, %v1236_v8  ;;  %v1238_v54 = vadd.f32 %v1237_v10, %v2865_v40  ;;  %1901 = vmatprep.mubr.bf16.mxu1 %v1480_v7  ;;  %v1424_v44 = vmax.f32 %v1347_v18, 0.0 }
 0x188   :  { %v1241_v17 = vpop.f32.mrf.mxu0  ;;  %1902 = vmatmul.mubr.bf16.vlgmr.msra.gmra.mxu1 %v1479_v9 }
 0x189   :  { %v1354_v23 = vpop.f32.mrf.mxu1  ;;  %v1351_v24 = vadd.f32 %v1350_v11, %v1238_v54  ;;  %v1427_v36 = vmax.f32 %v1349_v53, 0.0  ;;  %v1242_v59 = vadd.f32 %v1241_v17, %v2868_v49 }
 0x18a   :  { %v1243_v37 = vpop.f32.mrf.mxu0 }
 0x18b   :  { %v1356_v43 = vpop.f32.mrf.mxu1  ;;  %v1428_v19 = vmax.f32 %v1351_v24, 0.0  ;;  %v1244_v20 = vadd.f32 %v1243_v37, %v2865_v40  ;;  %v1483_v25 = vpack.c.bf16 %v1427_v36, %v1423_v58  ;;  %v1355_v30 = vadd.f32 %v1354_v23, %v1242_v59 }
 0x18c   :  { %v1245_v1 = vpop.f32.mrf.mxu0 }
 0x18d   :  { %v1358_v2 = vpop.f32.mrf.mxu1  ;;  %v1484_v14 = vpack.c.bf16 %v1428_v19, %v1424_v44  ;;  %v1246_v15 = vadd.f32 %v1245_v1, %v2868_v49  ;;  %v1357_v50 = vadd.f32 %v1356_v43, %v1244_v20  ;;  %v1431_v34 = vmax.f32 %v1355_v30, 0.0 }
 0x18e   :  { %v1247_v26 = vpop.f32.mrf.mxu0 }
 0x18f   :  { %v1360_v41 = vpop.f32.mrf.mxu1  ;;  %v1359_v21 = vadd.f32 %v1358_v2, %v1246_v15  ;;  %v1248_v4 = vadd.f32 %v1247_v26, %v2865_v40  ;;  %1909 = vmatprep.mubr.bf16.mxu1 %v1484_v14  ;;  %v1432_v31 = vmax.f32 %v1357_v50, 0.0 }
 0x190   :  { %v1251_v5 = vpop.f32.mrf.mxu0  ;;  %1910 = vmatmul.mubr.bf16.gmra.mxu1 %v1483_v25 }
 0x191   :  { %v1364_v12 = vpop.f32.mrf.mxu1  ;;  %v1361_v13 = vadd.f32 %v1360_v41, %v1248_v4  ;;  %v1435_v22 = vmax.f32 %v1359_v21, 0.0  ;;  %v1252_v28 = vadd.f32 %v1251_v5, %v2868_v49 }
 0x192   :  { %v1253_v27 = vpop.f32.mrf.mxu0 }
 0x193   :  { %v1366_v29 = vpop.f32.mrf.mxu1  ;;  %v1436_v32 = vmax.f32 %v1361_v13, 0.0  ;;  %v1254_v33 = vadd.f32 %v1253_v27, %v2865_v40  ;;  %v1487_v45 = vpack.c.bf16 %v1435_v22, %v1431_v34  ;;  %v1365_v55 = vadd.f32 %v1364_v12, %v1252_v28 }
 0x194   :  { %v1255_v35 = vpop.f32.mrf.mxu0 }
 0x195   :  { %v1368_v38 = vpop.f32.mrf.mxu1  ;;  %v1488_v39 = vpack.c.bf16 %v1436_v32, %v1432_v31  ;;  %v1256_v42 = vadd.f32 %v1255_v35, %v2868_v49  ;;  %v1367_v48 = vadd.f32 %v1366_v29, %v1254_v33  ;;  %v1439_v7 = vmax.f32 %v1365_v55, 0.0 }
 0x196   :  { %v1257_v46 = vpop.f32.mrf.mxu0 }
 0x197   :  { %v1370_v47 = vpop.f32.mrf.mxu1  ;;  %v1369_v51 = vadd.f32 %v1368_v38, %v1256_v42  ;;  %v1258_v52 = vadd.f32 %v1257_v46, %v2865_v40  ;;  %1917 = vmatprep.mubr.bf16.mxu1 %v1488_v39  ;;  %v1440_v0 = vmax.f32 %v1367_v48, 0.0 }
 0x198   :  { %v1261_v56 = vpop.f32.mrf.mxu0  ;;  %1918 = vmatmul.mubr.bf16.gmra.mxu1 %v1487_v45 }
 0x199   :  { %v1374_v57 = vpop.f32.mrf.mxu1  ;;  %v1371_v60 = vadd.f32 %v1370_v47, %v1258_v52  ;;  %v1443_v61 = vmax.f32 %v1369_v51, 0.0  ;;  %v1262_v8 = vadd.f32 %v1261_v56, %v2868_v49 }
 0x19a   :  { %v1263_v62 = vpop.f32.mrf.mxu0 }
 0x19b   :  { %v1376_v63 = vpop.f32.mrf.mxu1  ;;  %v1444_v3 = vmax.f32 %v1371_v60, 0.0  ;;  %v1264_v6 = vadd.f32 %v1263_v62, %v2865_v40  ;;  %v1491_v53 = vpack.c.bf16 %v1443_v61, %v1439_v7  ;;  %v1375_v36 = vadd.f32 %v1374_v57, %v1262_v8 }
 0x19c   :  { %v1265_v9 = vpop.f32.mrf.mxu0 }
 0x19d   :  { %v1378_v10 = vpop.f32.mrf.mxu1  ;;  %v1492_v11 = vpack.c.bf16 %v1444_v3, %v1440_v0  ;;  %v1266_v18 = vadd.f32 %v1265_v9, %v2868_v49  ;;  %v1377_v17 = vadd.f32 %v1376_v63, %v1264_v6  ;;  %v1447_v14 = vmax.f32 %v1375_v36, 0.0 }
 0x19e   :  { %v1267_v54 = vpop.f32.mrf.mxu0 }
 0x19f   :  { %v1380_v16 = vpop.f32.mrf.mxu1  ;;  %v1379_v23 = vadd.f32 %v1378_v10, %v1266_v18  ;;  %v1268_v24 = vadd.f32 %v1267_v54, %v2865_v40  ;;  %1925 = vmatprep.mubr.bf16.mxu1 %v1492_v11  ;;  %v1448_v59 = vmax.f32 %v1377_v17, 0.0 }
 0x1a0   :  { %v1271_v37 = vpop.f32.mrf.mxu0  ;;  %1926 = vmatmul.mubr.bf16.gmra.mxu1 %v1491_v53 }
 0x1a1   :  { %v1384_v43 = vpop.f32.mrf.mxu1  ;;  %v1381_v44 = vadd.f32 %v1380_v16, %v1268_v24  ;;  %v1451_v19 = vmax.f32 %v1379_v23, 0.0  ;;  %v1272_v15 = vadd.f32 %v1271_v37, %v2868_v49 }
 0x1a2   :  { %v1273_v20 = vpop.f32.mrf.mxu0 }
 0x1a3   :  { %v1386_v58 = vpop.f32.mrf.mxu1  ;;  %v1452_v1 = vmax.f32 %v1381_v44, 0.0  ;;  %v1274_v2 = vadd.f32 %v1273_v20, %v2865_v40  ;;  %v1495_v21 = vpack.c.bf16 %v1451_v19, %v1447_v14  ;;  %v1385_v22 = vadd.f32 %v1384_v43, %v1272_v15 }
 0x1a4   :  { %v1275_v25 = vpop.f32.mrf.mxu0 }
 0x1a5   :  { %v1388_v26 = vpop.f32.mrf.mxu1  ;;  %v1496_v41 = vpack.c.bf16 %v1452_v1, %v1448_v59  ;;  %v1276_v50 = vadd.f32 %v1275_v25, %v2868_v49  ;;  %v1387_v5 = vadd.f32 %v1386_v58, %v1274_v2  ;;  %v1455_v39 = vmax.f32 %v1385_v22, 0.0 }
 0x1a6   :  { %v1277_v4 = vpop.f32.mrf.mxu0 }
 0x1a7   :  { %v1390_v30 = vpop.f32.mrf.mxu1  ;;  %v1389_v12 = vadd.f32 %v1388_v26, %v1276_v50  ;;  %v1278_v13 = vadd.f32 %v1277_v4, %v2865_v40  ;;  %1933 = vmatprep.mubr.bf16.mxu1 %v1496_v41  ;;  %v1456_v28 = vmax.f32 %v1387_v5, 0.0 }
 0x1a8   :  { %v1281_v27 = vpop.f32.mrf.mxu0  ;;  %1934 = vmatmul.mubr.bf16.gmra.mxu1 %v1495_v21 }
 0x1a9   :  { %v1394_v29 = vpop.f32.mrf.mxu1  ;;  %v1391_v31 = vadd.f32 %v1390_v30, %v1278_v13  ;;  %v1459_v32 = vmax.f32 %v1389_v12, 0.0  ;;  %v1282_v42 = vadd.f32 %v1281_v27, %v2868_v49 }
 0x1aa   :  { %v1283_v33 = vpop.f32.mrf.mxu0 }
 0x1ab   :  { %v1396_v34 = vpop.f32.mrf.mxu1  ;;  %v1460_v35 = vmax.f32 %v1391_v31, 0.0  ;;  %v1284_v38 = vadd.f32 %v1283_v33, %v2865_v40  ;;  %v1499_v51 = vpack.c.bf16 %v1459_v32, %v1455_v39  ;;  %v1395_v61 = vadd.f32 %v1394_v29, %v1282_v42 }
 0x1ac   :  { %v1285_v45 = vpop.f32.mrf.mxu0 }
 0x1ad   :  { %v1398_v46 = vpop.f32.mrf.mxu1  ;;  %v1500_v47 = vpack.c.bf16 %v1460_v35, %v1456_v28  ;;  %v1286_v48 = vadd.f32 %v1285_v45, %v2868_v49  ;;  %v1397_v56 = vadd.f32 %v1396_v34, %v1284_v38  ;;  %v1463_v11 = vmax.f32 %v1395_v61, 0.0  ;;  %v2905_v34 = vld [vmem:[%s2930_s4] ss:$0 sm:$0xff] }
 0x1ae   :  { %v1287_v52 = vpop.f32.mrf.mxu0 }
 0x1af   :  { %v1400_v55 = vpop.f32.mrf.mxu1  ;;  %v1399_v57 = vadd.f32 %v1398_v46, %v1286_v48  ;;  %v1288_v60 = vadd.f32 %v1287_v52, %v2865_v40  ;;  %1941 = vmatprep.mubr.bf16.mxu1 %v1500_v47  ;;  %v1464_v8 = vmax.f32 %v1397_v56, 0.0 }
 0x1b0   :  { %v1291_v62 = vpop.f32.mrf.mxu0  ;;  %1942 = vmatmul.mubr.bf16.gmra.mxu1 %v1499_v51 }
 0x1b1   :  { %v1404_v63 = vpop.f32.mrf.mxu1  ;;  %v1401_v0 = vadd.f32 %v1400_v55, %v1288_v60  ;;  %v1467_v3 = vmax.f32 %v1399_v57, 0.0  ;;  %v1292_v18 = vadd.f32 %v1291_v62, %v2868_v49 }
 0x1b2   :  { %v1293_v6 = vpop.f32.mrf.mxu0 }
 0x1b3   :  { %v1406_v7 = vpop.f32.mrf.mxu1  ;;  %v1468_v9 = vmax.f32 %v1401_v0, 0.0  ;;  %v1294_v10 = vadd.f32 %v1293_v6, %v2865_v40  ;;  %v1503_v23 = vpack.c.bf16 %v1467_v3, %v1463_v11  ;;  %v1405_v44 = vadd.f32 %v1404_v63, %v1292_v18 }
 0x1b4   :  { %v1295_v53 = vpop.f32.mrf.mxu0 }
 0x1b5   :  { %v1408_v54 = vpop.f32.mrf.mxu1  ;;  %v1504_v16 = vpack.c.bf16 %v1468_v9, %v1464_v8  ;;  %v1296_v17 = vadd.f32 %v1295_v53, %v2868_v49  ;;  %v1407_v36 = vadd.f32 %v1406_v7, %v1294_v10  ;;  %v1471_v2 = vmax.f32 %v1405_v44, 0.0 }
 0x1b6   :  { %v1297_v24 = vpop.f32.mrf.mxu0 }
 0x1b7   :  { %v1409_v37 = vadd.f32 %v1408_v54, %v1296_v17  ;;  %v1298_v43 = vadd.f32 %v1297_v24, %v2865_v40  ;;  %1949 = vmatprep.mubr.bf16.mxu1 %v1504_v16  ;;  %v1410_v19 = vpop.f32.mrf.mxu1  ;;  %v1472_v59 = vmax.f32 %v1407_v36, 0.0 }
 0x1b8   :  { %1950 = vmatmul.mubr.bf16.gmra.mxu1 %v1503_v23 }
 0x1b9   :  { %v1411_v20 = vadd.f32 %v1410_v19, %v1298_v43  ;;  %v1475_v58 = vmax.f32 %v1409_v37, 0.0 }
 0x1bb   :  { %v1476_v1 = vmax.f32 %v1411_v20, 0.0  ;;  %v1507_v15 = vpack.c.bf16 %v1475_v58, %v1471_v2 }
 0x1bd   :  { %v1508_v14 = vpack.c.bf16 %v1476_v1, %v1472_v59 }
 0x1bf   :  { %1957 = vmatprep.mubr.bf16.mxu1 %v1508_v14 }
 0x1c0   :  { %1958 = vmatmul.mubr.bf16.gmra.mxu1 %v1507_v15 }
 0x208   :  { %v2178_v49 = vpop.f32.mrf.mxu0 }
 0x20a   :  { %v2179_v25 = vpop.f32.mrf.mxu0 }
 0x20b   :  { %v2180_v33 = vadd.f32 %v2179_v25, %v2178_v49 }
 0x20c   :  { %v2181_v26 = vpop.f32.mrf.mxu0 }
 0x20d   :  { %v1807_v39 = vadd.f32 %v2180_v33, %v2905_v34 }
 0x20e   :  { %v2182_v41 = vpop.f32.mrf.mxu0 }
 0x20f   :  { %v2183_v42 = vadd.f32 %v2182_v41, %v2181_v26 }
 0x210   :  { %v2184_v50 = vpop.f32.mrf.mxu0 }
 0x211   :  { %v1810_v52 = vadd.f32 %v2183_v42, %v2905_v34 }
 0x212   :  { %v2185_v21 = vpop.f32.mrf.mxu0 }
 0x213   :  { %v2186_v55 = vadd.f32 %v2185_v21, %v2184_v50 }
 0x214   :  { %v2187_v40 = vpop.f32.mrf.mxu0 }
 0x215   :  { %v1815_v63 = vadd.f32 %v2186_v55, %v2905_v34 }
 0x216   :  { %v2188_v4 = vpop.f32.mrf.mxu0 }
 0x217   :  { %v2189_v0 = vadd.f32 %v2188_v4, %v2187_v40 }
 0x218   :  { %v2190_v30 = vpop.f32.mrf.mxu0 }
 0x219   :  { %v1818_v10 = vadd.f32 %v2189_v0, %v2905_v34 }
 0x21a   :  { %v2191_v5 = vpop.f32.mrf.mxu0 }
 0x21b   :  { %v2192_v11 = vadd.f32 %v2191_v5, %v2190_v30 }
 0x21c   :  { %v2193_v12 = vpop.f32.mrf.mxu0 }
 0x21d   :  { %v1823_v23 = vadd.f32 %v2192_v11, %v2905_v34 }
 0x21e   :  { %v2194_v13 = vpop.f32.mrf.mxu0 }
 0x21f   :  { %v2195_v24 = vadd.f32 %v2194_v13, %v2193_v12 }
 0x220   :  { %v2196_v22 = vpop.f32.mrf.mxu0 }
 0x221   :  { %v1826_v20 = vadd.f32 %v2195_v24, %v2905_v34 }
 0x222   :  { %v2197_v27 = vpop.f32.mrf.mxu0 }
 0x223   :  { %v2198_v58 = vadd.f32 %v2197_v27, %v2196_v22 }
 0x224   :  { %v2199_v29 = vpop.f32.mrf.mxu0 }
 0x225   :  { %v1831_v49 = vadd.f32 %v2198_v58, %v2905_v34 }
 0x226   :  { %v2200_v31 = vpop.f32.mrf.mxu0 }
 0x227   :  { %v2201_v25 = vadd.f32 %v2200_v31, %v2199_v29 }
 0x228   :  { %v2202_v32 = vpop.f32.mrf.mxu0 }
 0x229   :  { %v1834_v4 = vadd.f32 %v2201_v25, %v2905_v34 }
 0x22a   :  { %v2203_v28 = vpop.f32.mrf.mxu0 }
 0x22b   :  { %v2204_v30 = vadd.f32 %v2203_v28, %v2202_v32 }
 0x22c   :  { %v2205_v46 = vpop.f32.mrf.mxu0 }
 0x22d   :  { %v1839_v33 = vadd.f32 %v2204_v30, %v2905_v34 }
 0x22e   :  { %v2206_v57 = vpop.f32.mrf.mxu0 }
 0x230   :  { %v2208_v6 = vpop.f32.mrf.mxu0 }
 0x232   :  { %v2209_v53 = vpop.f32.mrf.mxu0 }
 0x234   :  { %v2211_v37 = vpop.f32.mrf.mxu0 }
 0x236   :  { %v2212_v1 = vpop.f32.mrf.mxu0 }
 0x238   :  { %v2214_v41 = vpop.f32.mrf.mxu0 }
 0x23a   :  { %v2215_v12 = vpop.f32.mrf.mxu0 }
 0x23b   :  { %v2216_v0 = vadd.f32 %v2215_v12, %v2214_v41 }
 0x23c   :  { %v2217_v31 = vpop.f32.mrf.mxu0 }
 0x23e   :  { %v2218_v28 = vpop.f32.mrf.mxu0 }
 0x23f   :  { %v2219_v11 = vadd.f32 %v2218_v28, %v2217_v31 }
 0x248   :  { %v2242_v35 = vpop.f32.mrf.mxu1 }
 0x24a   :  { %v2243_v38 = vpop.f32.mrf.mxu1 }
 0x24b   :  { %v2244_v45 = vadd.f32 %v2243_v38, %v2242_v35  ;;  %v2207_v35 = vadd.f32 %v2206_v57, %v2205_v46  ;;  %v2220_v57 = vpop.f32.mrf.mxu0 }
 0x24c   :  { %v2245_v47 = vpop.f32.mrf.mxu1 }
 0x24d   :  { %v1904_v48 = vadd.f32 %v2244_v45, %v1807_v39  ;;  %v1842_v45 = vadd.f32 %v2207_v35, %v2905_v34 }
 0x24e   :  { %v2246_v51 = vpop.f32.mrf.mxu1 }
 0x24f   :  { %1966 = vst [vmem:[#allocation10] sm:$0xff] %v1904_v48  ;;  %v2247_v56 = vadd.f32 %v2246_v51, %v2245_v47  ;;  %v2210_v47 = vadd.f32 %v2209_v53, %v2208_v6  ;;  %v2221_v6 = vpop.f32.mrf.mxu0 }
 0x250   :  { %v2248_v60 = vpop.f32.mrf.mxu1  ;;  %v2222_v24 = vadd.f32 %v2221_v6, %v2220_v57 }
 0x251   :  { %v1907_v61 = vadd.f32 %v2247_v56, %v1810_v52  ;;  %v1847_v55 = vadd.f32 %v2210_v47, %v2905_v34  ;;  %v2213_v56 = vadd.f32 %v2212_v1, %v2211_v37  ;;  %v2223_v53 = vpop.f32.mrf.mxu0 }
 0x252   :  { %v2249_v62 = vpop.f32.mrf.mxu1 }
 0x253   :  { %1967 = vst [vmem:[#allocation10 + $0x8] sm:$0xff] %v1907_v61  ;;  %v2250_v3 = vadd.f32 %v2249_v62, %v2248_v60  ;;  %v2224_v37 = vpop.f32.mrf.mxu0 }
 0x254   :  { %v2251_v7 = vpop.f32.mrf.mxu1  ;;  %v2225_v58 = vadd.f32 %v2224_v37, %v2223_v53 }
 0x255   :  { %v1912_v8 = vadd.f32 %v2250_v3, %v1815_v63  ;;  %v1850_v63 = vadd.f32 %v2213_v56, %v2905_v34 }
 0x256   :  { %v2252_v9 = vpop.f32.mrf.mxu1 }
 0x257   :  { %1968 = vst [vmem:[#allocation10 + $0x10] sm:$0xff] %v1912_v8  ;;  %v2253_v18 = vadd.f32 %v2252_v9, %v2251_v7 }
 0x258   :  { %v2254_v54 = vpop.f32.mrf.mxu1 }
 0x259   :  { %v1915_v16 = vadd.f32 %v2253_v18, %v1818_v10  ;;  %v1855_v10 = vadd.f32 %v2216_v0, %v2905_v34 }
 0x25a   :  { %v2255_v17 = vpop.f32.mrf.mxu1 }
 0x25b   :  { %1969 = vst [vmem:[#allocation10 + $0x18] sm:$0xff] %v1915_v16  ;;  %v2256_v36 = vadd.f32 %v2255_v17, %v2254_v54 }
 0x25c   :  { %v2257_v43 = vpop.f32.mrf.mxu1 }
 0x25d   :  { %v1920_v44 = vadd.f32 %v2256_v36, %v1823_v23  ;;  %v1858_v23 = vadd.f32 %v2219_v11, %v2905_v34 }
 0x25e   :  { %v2258_v19 = vpop.f32.mrf.mxu1 }
 0x25f   :  { %1970 = vst [vmem:[#allocation10 + $0x20] sm:$0xff] %v1920_v44  ;;  %v2259_v59 = vadd.f32 %v2258_v19, %v2257_v43 }
 0x260   :  { %v2260_v2 = vpop.f32.mrf.mxu1 }
 0x261   :  { %v1923_v14 = vadd.f32 %v2259_v59, %v1826_v20  ;;  %v1863_v20 = vadd.f32 %v2222_v24, %v2905_v34 }
 0x262   :  { %v2261_v15 = vpop.f32.mrf.mxu1 }
 0x263   :  { %1971 = vst [vmem:[#allocation10 + $0x28] sm:$0xff] %v1923_v14  ;;  %v2262_v26 = vadd.f32 %v2261_v15, %v2260_v2  ;;  %v1866_v15 = vadd.f32 %v2225_v58, %v2905_v34 }
 0x264   :  { %v2263_v50 = vpop.f32.mrf.mxu1 }
 0x265   :  { %v1928_v21 = vadd.f32 %v2262_v26, %v1831_v49 }
 0x266   :  { %v2264_v40 = vpop.f32.mrf.mxu1 }
 0x267   :  { %1972 = vst [vmem:[#allocation10 + $0x30] sm:$0xff] %v1928_v21  ;;  %v2265_v5 = vadd.f32 %v2264_v40, %v2263_v50 }
 0x268   :  { %v2266_v13 = vpop.f32.mrf.mxu1 }
 0x269   :  { %v1931_v22 = vadd.f32 %v2265_v5, %v1834_v4 }
 0x26a   :  { %v2267_v27 = vpop.f32.mrf.mxu1 }
 0x26b   :  { %1973 = vst [vmem:[#allocation10 + $0x38] sm:$0xff] %v1931_v22  ;;  %v2268_v29 = vadd.f32 %v2267_v27, %v2266_v13 }
 0x26c   :  { %v2269_v38 = vpop.f32.mrf.mxu1 }
 0x26d   :  { %v1936_v39 = vadd.f32 %v2268_v29, %v1839_v33 }
 0x26e   :  { %v2270_v42 = vpop.f32.mrf.mxu1 }
 0x26f   :  { %1974 = vst [vmem:[#allocation10 + $0x40] sm:$0xff] %v1936_v39  ;;  %v2271_v32 = vadd.f32 %v2270_v42, %v2269_v38 }
 0x270   :  { %v2272_v48 = vpop.f32.mrf.mxu1 }
 0x271   :  { %v1939_v51 = vadd.f32 %v2271_v32, %v1842_v45 }
 0x272   :  { %v2273_v52 = vpop.f32.mrf.mxu1 }
 0x273   :  { %1975 = vst [vmem:[#allocation10 + $0x48] sm:$0xff] %v1939_v51  ;;  %v2274_v46 = vadd.f32 %v2273_v52, %v2272_v48 }
 0x274   :  { %v2275_v60 = vpop.f32.mrf.mxu1 }
 0x275   :  { %v1944_v61 = vadd.f32 %v2274_v46, %v1847_v55 }
 0x276   :  { %v2276_v62 = vpop.f32.mrf.mxu1 }
 0x277   :  { %1976 = vst [vmem:[#allocation10 + $0x50] sm:$0xff] %v1944_v61  ;;  %v2277_v3 = vadd.f32 %v2276_v62, %v2275_v60 }
 0x278   :  { %v2278_v7 = vpop.f32.mrf.mxu1 }
 0x279   :  { %v1947_v8 = vadd.f32 %v2277_v3, %v1850_v63 }
 0x27a   :  { %v2279_v9 = vpop.f32.mrf.mxu1 }
 0x27b   :  { %1977 = vst [vmem:[#allocation10 + $0x58] sm:$0xff] %v1947_v8  ;;  %v2280_v18 = vadd.f32 %v2279_v9, %v2278_v7 }
 0x27c   :  { %v2281_v54 = vpop.f32.mrf.mxu1 }
 0x27d   :  { %v1952_v16 = vadd.f32 %v2280_v18, %v1855_v10 }
 0x27e   :  { %v2282_v17 = vpop.f32.mrf.mxu1 }
 0x27f   :  { %1978 = vst [vmem:[#allocation10 + $0x60] sm:$0xff] %v1952_v16  ;;  %v2283_v36 = vadd.f32 %v2282_v17, %v2281_v54 }
 0x280   :  { %v2284_v43 = vpop.f32.mrf.mxu1 }
 0x281   :  { %v1955_v44 = vadd.f32 %v2283_v36, %v1858_v23 }
 0x282   :  { %v2285_v19 = vpop.f32.mrf.mxu1 }
 0x283   :  { %1979 = vst [vmem:[#allocation10 + $0x68] sm:$0xff] %v1955_v44  ;;  %v2286_v59 = vadd.f32 %v2285_v19, %v2284_v43 }
 0x284   :  { %v2287_v1 = vpop.f32.mrf.mxu1 }
 0x285   :  { %v1960_v2 = vadd.f32 %v2286_v59, %v1863_v20 }
 0x286   :  { %v2288_v14 = vpop.f32.mrf.mxu1 }
 0x287   :  { %1980 = vst [vmem:[#allocation10 + $0x70] sm:$0xff] %v1960_v2  ;;  %v2289_v49 = vadd.f32 %v2288_v14, %v2287_v1 }
 0x289   :  { %v1963_v25 = vadd.f32 %v2289_v49, %v1866_v15 }
 0x28b   :  { %1981 = vst [vmem:[#allocation10 + $0x78] sm:$0xff] %v1963_v25 }
 0x28c   :  { %1986 = vsyncadd [#allocation4], 1920  ;;  %s2645_s4 = smov [#allocation10]  }
 0x28d   :  { %s1987_s18 = sshll.u32 %s2645_s4, 4  ;;  %s1988_s18 = int_to_ptr.vmem [resolvable:$true] %s1987_s18 }
 0x28e   :  { %s2607_s19 = scalar_lea.vmem %s1988_s18, 128  ;;  %s2611_s20 = scalar_lea.vmem %s1988_s18, 2048 }
 0x28f   :  { %p2608_p6 = scmp.ne.s32.totalorder %s1988_s18, %s2607_s19  ;;  %p2612_p7 = scmp.lt.s32.totalorder %s1988_s18, %s1988_s18 }
 0x290   :  { %p2613_p8 = scmp.lt.s32.totalorder %s2611_s20, %s2607_s19 }
 0x292   :  { %p2614_p9 = por %p2613_p8, %p2612_p7 }
 0x294   :  { %p2615_p10 = pnand %p2614_p9, %p2608_p6 }
 0x296   :  { %2618 = shalt.err (!%p2615_p10)
}
 0x297   :  { %s2646_s21 = smov 128   ;;  %s2647_s22 = smov 8  }
 0x298   :  { %1993 = dma.vmem_to_hbm [thread:$0]  %s1988_s18, 128, %s2931_s5, [#allocation4], %s2646_s21, %s2646_s21, %s2647_s22  }
 0x299   :  { %2633 = dma.done.wait [#allocation4], 2048  }
 0x29a   :  { %2634 = vsyncadd [#allocation4], 4294965248 }
 0x29b   :  { %1997 = vsyncpa [#allocation3], 1 }
 0x29c   :  { %1998 = vsyncpa [#allocation6], 1 }
 0x29d   :  { %1999 = vsyncpa [#allocation9], 1 }
 0x29e   :  { %2000 = vsyncpa [#allocation4], 1 }

</bundles_post_ra>
